<compile_context>
chip_gen: v5e
topology: v5e:2x2
jax: 0.10.0
libtpu: 0.0.40
codegen_flags: <defaults>
</compile_context>

<pallas_src>
import functools
from dataclasses import dataclass

import jax
import jax.numpy as jnp
from jax.experimental import pallas as pl
from jax.experimental.pallas import tpu as pltpu


@dataclass
class FlatArgs:
    w_bits: int = 4
    a_bits: int = 4
    w_asym: bool = False
    a_asym: bool = False
    lwc: bool = False
    lac: bool = False
    a_groupsize: int = -1
    add_diag: bool = False


# ---------------------------------------------------------------------------
# Shared math helpers (pure jnp -> used by the wrapper, the kernels and the
# pure-JAX reference, so the quantization decisions are identical everywhere).
# ---------------------------------------------------------------------------
def _kron_apply(x, L, R):
    """x @ kron(L, R) applied via the small factors (never densifies kron)."""
    a, b = L.shape[0], R.shape[0]
    lead = x.shape[:-1]
    x3 = x.reshape(lead + (a, b))
    y = jnp.einsum("...kl,lc->...kc", x3, R)   # contract the R (fast) factor
    y = jnp.einsum("...kc,kd->...dc", y, L)    # contract the L (slow) factor
    return y.reshape(lead + (a * b,))


def _weight_quant_codes(w, bits):
    """Per-output-channel symmetric quant (WeightQuantizer: perchannel, sym, mse=False).

    Returns integer codes in [-(maxq+1)/2, (maxq-1)/2] and the per-row f32 scale;
    dequantized weight == scale * codes.
    """
    maxq = 2.0 ** bits - 1.0
    wmin = jnp.min(w, axis=-1, keepdims=True)
    wmax = jnp.max(w, axis=-1, keepdims=True)
    amax = jnp.maximum(jnp.abs(wmin), wmax)               # sym: xmax = max(|xmin|, xmax)
    all_zero = jnp.logical_and(wmin == 0.0, wmax == 0.0)
    amax = jnp.where(all_zero, 1.0, amax)                 # degenerate rows -> [-1, 1]
    scale = (2.0 * amax) / maxq
    zero = (maxq + 1.0) / 2.0
    q = jnp.clip(jnp.round(w / scale) + zero, 0.0, maxq)
    return q - zero, scale


def _act_quant_codes(x, bits):
    """Per-token symmetric quant (ActivationQuantizer: sym, groupsize=-1, lac=False).

    Returns integer codes in [-(qmax+1), qmax] and the per-token f32 scale;
    dequantized activation == scale * codes.  Uses a per-row reciprocal so the hot
    per-element path is a multiply, not a divide.
    """
    qmax = 2.0 ** (bits - 1) - 1.0
    amax = jnp.max(jnp.abs(x), axis=-1, keepdims=True)
    amax = jnp.where(amax == 0.0, 1.0, amax)
    inv_scale = qmax / amax                               # [rows, 1] divide only
    codes = jnp.clip(jnp.round(x * inv_scale), -(qmax + 1.0), qmax)
    scale = amax * (1.0 / qmax)
    return codes, scale


# ---------------------------------------------------------------------------
# Pallas kernels
# ---------------------------------------------------------------------------
def _gate_up_kernel(xts_ref, w1c_ref, w1s_ref, w3c_ref, w3s_ref, h_ref,
                    xq_sc, xs_sc, *, a_bits):
    # xts_ref: [tm, H] bf16   transformed activations
    # w1c/w3c: [H, tn] bf16   K-major 4-bit weight codes (gate / up)
    # w1s/w3s: [1, tn] f32    per-output-channel weight scales
    # h_ref:   [tm, tn] bf16  silu(gate) * up
    # xq_sc:   [tm, H] bf16   cached activation codes (reused for every j)
    # xs_sc:   [tm, 1] f32    cached per-token activation scale
    @pl.when(pl.program_id(1) == 0)
    def _():
        codes, scale = _act_quant_codes(xts_ref[...].astype(jnp.float32), a_bits)
        xq_sc[...] = codes.astype(xq_sc.dtype)
        xs_sc[...] = scale

    codes = xq_sc[...]
    gate = jnp.dot(codes, w1c_ref[...], preferred_element_type=jnp.float32)
    up = jnp.dot(codes, w3c_ref[...], preferred_element_type=jnp.float32)
    # Fold the (exact) f32 scales in after the integer-code dot.
    gate = gate * xs_sc[...] * w1s_ref[...]
    up = up * xs_sc[...] * w3s_ref[...]
    h_ref[...] = ((gate * jax.lax.logistic(gate)) * up).astype(h_ref.dtype)


def _down_kernel(hts_ref, w2c_ref, w2s_ref, o_ref, hq_sc, hs_sc, *, a_bits):
    # hts_ref: [tm, I] bf16, w2c: [I, tn] bf16, w2s: [1, tn] f32, o_ref: [tm, tn] bf16
    @pl.when(pl.program_id(1) == 0)
    def _():
        codes, scale = _act_quant_codes(hts_ref[...].astype(jnp.float32), a_bits)
        hq_sc[...] = codes.astype(hq_sc.dtype)
        hs_sc[...] = scale

    acc = jnp.dot(hq_sc[...], w2c_ref[...], preferred_element_type=jnp.float32)
    o_ref[...] = (acc * hs_sc[...] * w2s_ref[...]).astype(o_ref.dtype)


# ---------------------------------------------------------------------------
# Wrapper: FlatQuantMLP._trans_forward
# ---------------------------------------------------------------------------
def flatquant_mlp_forward(x, params, flat_args, *, tm=256, tn=256,
                          act_dtype=jnp.bfloat16):
    B, S, H = x.shape
    T = B * S
    f32 = jnp.float32

    Lu, Ru = params["Lu"].astype(f32), params["Ru"].astype(f32)
    Ld, Rd = params["Ld"].astype(f32), params["Rd"].astype(f32)
    w1 = params["w1"].astype(f32)   # gate_proj [I, H]
    w3 = params["w3"].astype(f32)   # up_proj   [I, H]
    w2 = params["w2"].astype(f32)   # down_proj [H, I]
    I = w1.shape[0]

    # ---- one-time weight-side prep (plain XLA, hoisted out of the kernels) ----
    # apply_trans(inv_t=True): W' = W @ kron(L,R)^{-T} = W @ kron(inv(L).T, inv(R).T)
    LuiT, RuiT = jnp.linalg.inv(Lu).T, jnp.linalg.inv(Ru).T
    LdiT, RdiT = jnp.linalg.inv(Ld).T, jnp.linalg.inv(Rd).T
    w1_t = _kron_apply(w1, LuiT, RuiT)
    w3_t = _kron_apply(w3, LuiT, RuiT)
    w2_t = _kron_apply(w2, LdiT, RdiT)

    w1c, w1s = _weight_quant_codes(w1_t, flat_args.w_bits)
    w3c, w3s = _weight_quant_codes(w3_t, flat_args.w_bits)
    w2c, w2s = _weight_quant_codes(w2_t, flat_args.w_bits)
    # K-major code matrices (natural (M,K)x(K,N) dots, no in-kernel transpose);
    # 4-bit integer codes are exactly representable in bf16.
    w1c_km = w1c.T.astype(act_dtype)            # [H, I]
    w3c_km = w3c.T.astype(act_dtype)            # [H, I]
    w2c_km = w2c.T.astype(act_dtype)            # [I, H]
    w1s_r = w1s.reshape(1, I).astype(f32)
    w3s_r = w3s.reshape(1, I).astype(f32)
    w2s_r = w2s.reshape(1, H).astype(f32)

    # ---- activation-side Kronecker transform (factorized, no dense K) ----
    x2 = x.reshape(T, H)
    x_ts = _kron_apply(x2.astype(f32), Lu, Ru).astype(act_dtype)

    tm_ = min(tm, T)
    tn1 = min(tn, I)
    tn2 = min(tn, H)
    assert T % tm_ == 0 and I % tn1 == 0 and H % tn2 == 0  # TODO(synk): ragged shapes

    # j axis carries the cached act-quant scratch -> must stay "arbitrary";
    # i (token rows) is "parallel" for megacore sharding.
    cparams = pltpu.CompilerParams(
        dimension_semantics=("parallel", "arbitrary"),
        vmem_limit_bytes=48 * 1024 * 1024)

    # Fused: act fake-quant (cached over j) + gate/up quantized matmuls + SiLU*mul.
    h = pl.pallas_call(
        functools.partial(_gate_up_kernel, a_bits=flat_args.a_bits),
        out_shape=jax.ShapeDtypeStruct((T, I), act_dtype),
        grid_spec=pltpu.PrefetchScalarGridSpec(
            num_scalar_prefetch=0,
            grid=(T // tm_, I // tn1),
            in_specs=[
                pl.BlockSpec((tm_, H), lambda i, j: (i, 0)),
                pl.BlockSpec((H, tn1), lambda i, j: (0, j)),
                pl.BlockSpec((1, tn1), lambda i, j: (0, j)),
                pl.BlockSpec((H, tn1), lambda i, j: (0, j)),
                pl.BlockSpec((1, tn1), lambda i, j: (0, j)),
            ],
            out_specs=pl.BlockSpec((tm_, tn1), lambda i, j: (i, j)),
            scratch_shapes=[pltpu.VMEM((tm_, H), act_dtype),
                            pltpu.VMEM((tm_, 1), jnp.float32)]),
        compiler_params=cparams,
    )(x_ts, w1c_km, w1s_r, w3c_km, w3s_r)

    # down_trans on the bf16 intermediate (factorized Kronecker, plain XLA).
    h_ts = _kron_apply(h.astype(f32), Ld, Rd).astype(act_dtype)

    # Fused: act fake-quant (cached over j) + down quantized matmul.
    y = pl.pallas_call(
        functools.partial(_down_kernel, a_bits=flat_args.a_bits),
        out_shape=jax.ShapeDtypeStruct((T, H), act_dtype),
        grid_spec=pltpu.PrefetchScalarGridSpec(
            num_scalar_prefetch=0,
            grid=(T // tm_, H // tn2),
            in_specs=[
                pl.BlockSpec((tm_, I), lambda i, j: (i, 0)),
                pl.BlockSpec((I, tn2), lambda i, j: (0, j)),
                pl.BlockSpec((1, tn2), lambda i, j: (0, j)),
            ],
            out_specs=pl.BlockSpec((tm_, tn2), lambda i, j: (i, j)),
            scratch_shapes=[pltpu.VMEM((tm_, I), act_dtype),
                            pltpu.VMEM((tm_, 1), jnp.float32)]),
        compiler_params=cparams,
    )(h_ts, w2c_km, w2s_r)

    return y.reshape(B, S, H).astype(x.dtype)


# ---------------------------------------------------------------------------
# Pure-JAX reference (same math & same activation dtype boundaries, no Pallas).
# ---------------------------------------------------------------------------
def reference_forward(x, params, flat_args, act_dtype=jnp.bfloat16):
    B, S, H = x.shape
    T = B * S
    f32 = jnp.float32
    Lu, Ru = params["Lu"].astype(f32), params["Ru"].astype(f32)
    Ld, Rd = params["Ld"].astype(f32), params["Rd"].astype(f32)
    LuiT, RuiT = jnp.linalg.inv(Lu).T, jnp.linalg.inv(Ru).T
    LdiT, RdiT = jnp.linalg.inv(Ld).T, jnp.linalg.inv(Rd).T

    def deq_w(w, L, R):
        c, s = _weight_quant_codes(_kron_apply(w.astype(f32), L, R), flat_args.w_bits)
        return s * c

    w1q = deq_w(params["w1"], LuiT, RuiT)
    w3q = deq_w(params["w3"], LuiT, RuiT)
    w2q = deq_w(params["w2"], LdiT, RdiT)

    x2 = x.reshape(T, H).astype(act_dtype)
    x_ts = _kron_apply(x2.astype(f32), Lu, Ru).astype(act_dtype)
    ca, sa = _act_quant_codes(x_ts.astype(f32), flat_args.a_bits)
    xq = ca * sa
    gate = xq @ w1q.T
    up = xq @ w3q.T
    h = ((gate * jax.nn.sigmoid(gate)) * up).astype(act_dtype)
    h_ts = _kron_apply(h.astype(f32), Ld, Rd).astype(act_dtype)
    cb, sb = _act_quant_codes(h_ts.astype(f32), flat_args.a_bits)
    y = (cb * sb) @ w2q.T
    return y.reshape(B, S, H).astype(x.dtype)


if __name__ == "__main__":
    flat_args = FlatArgs()

    # Small shapes: hidden=64, intermediate=128, batch=2, seq=64.
    B, S, H, I = 2, 64, 64, 128

    key = jax.random.PRNGKey(0)
    k = jax.random.split(key, 8)
    x = jax.random.normal(k[0], (B, S, H), jnp.bfloat16)                 # model dtype
    w1 = jax.random.normal(k[1], (I, H), jnp.float32) / jnp.sqrt(H)      # gate_proj
    w3 = jax.random.normal(k[2], (I, H), jnp.float32) / jnp.sqrt(H)      # up_proj
    w2 = jax.random.normal(k[3], (H, I), jnp.float32) / jnp.sqrt(I)      # down_proj

    # SVDDecomposeTransMatrix factors: get_decompose_dim(64) -> (8, 8),
    # get_decompose_dim(128) -> (8, 16).  Identity + small perturbation (invertible).
    Lu = jnp.eye(8, dtype=jnp.float32) + 0.01 * jax.random.normal(k[4], (8, 8), jnp.float32)
    Ru = jnp.eye(8, dtype=jnp.float32) + 0.01 * jax.random.normal(k[5], (8, 8), jnp.float32)
    Ld = jnp.eye(8, dtype=jnp.float32) + 0.01 * jax.random.normal(k[6], (8, 8), jnp.float32)
    Rd = jnp.eye(16, dtype=jnp.float32) + 0.01 * jax.random.normal(k[7], (16, 16), jnp.float32)

    params = dict(w1=w1, w2=w2, w3=w3, Lu=Lu, Ru=Ru, Ld=Ld, Rd=Rd)

    y = flatquant_mlp_forward(x, params, flat_args)
    y = jax.block_until_ready(y)
    assert y.shape == (B, S, H) and y.dtype == x.dtype

    y_ref = reference_forward(x, params, flat_args)
    yf = y.astype(jnp.float32)
    rf = y_ref.astype(jnp.float32)
    rel_err = float(jnp.linalg.norm(yf - rf) / (jnp.linalg.norm(rf) + 1e-12))
    assert rel_err < 2e-2, f"relative error too large: {rel_err}"

    print("KERNEL_OK")
</pallas_src>

<mosaic_0001>
module attributes {stable_mosaic.version = 11 : i64} {
  func.func @_gate_up_kernel(%arg0: i32, %arg1: i32, %arg2: memref<128x64xbf16, #tpu.memory_space<vmem>>, %arg3: memref<64x128xbf16, #tpu.memory_space<vmem>>, %arg4: memref<1x128xf32, #tpu.memory_space<vmem>>, %arg5: memref<64x128xbf16, #tpu.memory_space<vmem>>, %arg6: memref<1x128xf32, #tpu.memory_space<vmem>>, %arg7: memref<128x128xbf16, #tpu.memory_space<vmem>>, %arg8: memref<128x64xbf16, #tpu.memory_space<vmem>>, %arg9: memref<128x1xf32, #tpu.memory_space<vmem>>) attributes {dimension_semantics = [#tpu.dimension_semantics<parallel>, #tpu.dimension_semantics<arbitrary>], iteration_bounds = array<i64: 1, 1>, scalar_prefetch = 0 : i64, scratch_operands = 2 : i64, tpu.core_type = #tpu.core_type<tc>, window_params = [{transform_indices = @transform_0, window_bounds = array<i64: 128, 64>}, {transform_indices = @transform_1, window_bounds = array<i64: 64, 128>}, {transform_indices = @transform_2, window_bounds = array<i64: 1, 128>}, {transform_indices = @transform_3, window_bounds = array<i64: 64, 128>}, {transform_indices = @transform_4, window_bounds = array<i64: 1, 128>}, {transform_indices = @transform_5, window_bounds = array<i64: 128, 128>}]} {
    %c0_i32 = arith.constant 0 : i32
    %0 = arith.cmpi eq, %arg1, %c0_i32 : i32
    %1 = arith.extui %0 : i1 to i32
    %c0_i32_0 = arith.constant 0 : i32
    %2 = arith.cmpi ne, %1, %c0_i32_0 : i32
    scf.if %2 {
      %c0_18 = arith.constant 0 : index
      %c0_19 = arith.constant 0 : index
      %29 = vector.load %arg2[%c0_18, %c0_19] : memref<128x64xbf16, #tpu.memory_space<vmem>>, vector<128x64xbf16>
      %30 = arith.extf %29 : vector<128x64xbf16> to vector<128x64xf32>
      %31 = math.absf %30 : vector<128x64xf32>
      %cst_20 = arith.constant dense<0xFF800000> : vector<128xf32>
      %32 = vector.multi_reduction <maximumf>, %31, %cst_20 [1] : vector<128x64xf32> to vector<128xf32>
      %33 = vector.shape_cast %32 : vector<128xf32> to vector<128x1xf32>
      %cst_21 = arith.constant 0.000000e+00 : f32
      %34 = vector.broadcast %cst_21 : f32 to vector<128x1xf32>
      %35 = arith.cmpf oeq, %33, %34 : vector<128x1xf32>
      %cst_22 = arith.constant 1.000000e+00 : f32
      %36 = vector.broadcast %cst_22 : f32 to vector<128x1xf32>
      %37 = arith.select %35, %36, %33 : vector<128x1xi1>, vector<128x1xf32>
      %cst_23 = arith.constant 7.000000e+00 : f32
      %38 = vector.broadcast %cst_23 : f32 to vector<128x1xf32>
      %39 = arith.divf %38, %37 : vector<128x1xf32>
      %40 = vector.broadcast %39 : vector<128x1xf32> to vector<128x64xf32>
      %41 = arith.mulf %30, %40 : vector<128x64xf32>
      %42 = math.roundeven %41 : vector<128x64xf32>
      %cst_24 = arith.constant -8.000000e+00 : f32
      %cst_25 = arith.constant 7.000000e+00 : f32
      %43 = vector.broadcast %cst_24 : f32 to vector<128x64xf32>
      %44 = arith.maximumf %43, %42 : vector<128x64xf32>
      %45 = vector.broadcast %cst_25 : f32 to vector<128x64xf32>
      %46 = arith.minimumf %45, %44 : vector<128x64xf32>
      %cst_26 = arith.constant 0.142857149 : f32
      %47 = vector.broadcast %cst_26 : f32 to vector<128x1xf32>
      %48 = arith.mulf %37, %47 : vector<128x1xf32>
      %49 = arith.truncf %46 : vector<128x64xf32> to vector<128x64xbf16>
      %c0_27 = arith.constant 0 : index
      %c0_28 = arith.constant 0 : index
      %50 = vector.load %arg8[%c0_27, %c0_28] : memref<128x64xbf16, #tpu.memory_space<vmem>>, vector<128x64xbf16>
      tpu.vector_store %arg8[%c0_27, %c0_28], %49 {strides = array<i32>} : memref<128x64xbf16, #tpu.memory_space<vmem>>, vector<128x64xbf16>,
      %c0_29 = arith.constant 0 : index
      %c0_30 = arith.constant 0 : index
      %51 = vector.load %arg9[%c0_29, %c0_30] : memref<128x1xf32, #tpu.memory_space<vmem>>, vector<128x1xf32>
      tpu.vector_store %arg9[%c0_29, %c0_30], %48 {strides = array<i32>} : memref<128x1xf32, #tpu.memory_space<vmem>>, vector<128x1xf32>,
    } else {
    }
    %c0 = arith.constant 0 : index
    %c0_1 = arith.constant 0 : index
    %3 = vector.load %arg8[%c0, %c0_1] : memref<128x64xbf16, #tpu.memory_space<vmem>>, vector<128x64xbf16>
    %c0_2 = arith.constant 0 : index
    %c0_3 = arith.constant 0 : index
    %4 = vector.load %arg3[%c0_2, %c0_3] : memref<64x128xbf16, #tpu.memory_space<vmem>>, vector<64x128xbf16>
    %cst = arith.constant dense<0.000000e+00> : vector<128x128xf32>
    %5 = tpu.matmul %3, %4, %cst {dimension_numbers = #tpu.dot_dimension_numbers<[1], [0], [0], [1], [0, 0, 1, 1], [], []>} : vector<128x64xbf16>, vector<64x128xbf16>, vector<128x128xf32> -> vector<128x128xf32>
    %c0_4 = arith.constant 0 : index
    %c0_5 = arith.constant 0 : index
    %6 = vector.load %arg5[%c0_4, %c0_5] : memref<64x128xbf16, #tpu.memory_space<vmem>>, vector<64x128xbf16>
    %cst_6 = arith.constant dense<0.000000e+00> : vector<128x128xf32>
    %7 = tpu.matmul %3, %6, %cst_6 {dimension_numbers = #tpu.dot_dimension_numbers<[1], [0], [0], [1], [0, 0, 1, 1], [], []>} : vector<128x64xbf16>, vector<64x128xbf16>, vector<128x128xf32> -> vector<128x128xf32>
    %c0_7 = arith.constant 0 : index
    %c0_8 = arith.constant 0 : index
    %8 = vector.load %arg9[%c0_7, %c0_8] : memref<128x1xf32, #tpu.memory_space<vmem>>, vector<128x1xf32>
    %9 = vector.broadcast %8 : vector<128x1xf32> to vector<128x128xf32>
    %10 = arith.mulf %5, %9 : vector<128x128xf32>
    %c0_9 = arith.constant 0 : index
    %c0_10 = arith.constant 0 : index
    %11 = vector.load %arg4[%c0_9, %c0_10] : memref<1x128xf32, #tpu.memory_space<vmem>>, vector<1x128xf32>
    %12 = vector.broadcast %11 : vector<1x128xf32> to vector<128x128xf32>
    %13 = arith.mulf %10, %12 : vector<128x128xf32>
    %c0_11 = arith.constant 0 : index
    %c0_12 = arith.constant 0 : index
    %14 = vector.load %arg9[%c0_11, %c0_12] : memref<128x1xf32, #tpu.memory_space<vmem>>, vector<128x1xf32>
    %15 = vector.broadcast %14 : vector<128x1xf32> to vector<128x128xf32>
    %16 = arith.mulf %7, %15 : vector<128x128xf32>
    %c0_13 = arith.constant 0 : index
    %c0_14 = arith.constant 0 : index
    %17 = vector.load %arg6[%c0_13, %c0_14] : memref<1x128xf32, #tpu.memory_space<vmem>>, vector<1x128xf32>
    %18 = vector.broadcast %17 : vector<1x128xf32> to vector<128x128xf32>
    %19 = arith.mulf %16, %18 : vector<128x128xf32>
    %20 = arith.negf %13 : vector<128x128xf32>
    %21 = math.exp %20 : vector<128x128xf32>
    %cst_15 = arith.constant 1.000000e+00 : f32
    %22 = vector.broadcast %cst_15 : f32 to vector<128x128xf32>
    %23 = arith.addf %22, %21 : vector<128x128xf32>
    %24 = arith.divf %22, %23 : vector<128x128xf32>
    %25 = arith.mulf %13, %24 : vector<128x128xf32>
    %26 = arith.mulf %25, %19 : vector<128x128xf32>
    %27 = arith.truncf %26 : vector<128x128xf32> to vector<128x128xbf16>
    %c0_16 = arith.constant 0 : index
    %c0_17 = arith.constant 0 : index
    %28 = vector.load %arg7[%c0_16, %c0_17] : memref<128x128xbf16, #tpu.memory_space<vmem>>, vector<128x128xbf16>
    tpu.vector_store %arg7[%c0_16, %c0_17], %27 {strides = array<i32>} : memref<128x128xbf16, #tpu.memory_space<vmem>>, vector<128x128xbf16>,
    return
  }
  func.func @transform_0(%arg0: i32, %arg1: i32) -> (i32, i32) {
    %c0_i32 = arith.constant 0 : i32
    %c0_i32_0 = arith.constant 0 : i32
    return %arg0, %c0_i32 : i32, i32
  }
  func.func @transform_1(%arg0: i32, %arg1: i32) -> (i32, i32) {
    %c0_i32 = arith.constant 0 : i32
    %c0_i32_0 = arith.constant 0 : i32
    return %c0_i32, %arg1 : i32, i32
  }
  func.func @transform_2(%arg0: i32, %arg1: i32) -> (i32, i32) {
    %c0_i32 = arith.constant 0 : i32
    %c0_i32_0 = arith.constant 0 : i32
    return %c0_i32, %arg1 : i32, i32
  }
  func.func @transform_3(%arg0: i32, %arg1: i32) -> (i32, i32) {
    %c0_i32 = arith.constant 0 : i32
    %c0_i32_0 = arith.constant 0 : i32
    return %c0_i32, %arg1 : i32, i32
  }
  func.func @transform_4(%arg0: i32, %arg1: i32) -> (i32, i32) {
    %c0_i32 = arith.constant 0 : i32
    %c0_i32_0 = arith.constant 0 : i32
    return %c0_i32, %arg1 : i32, i32
  }
  func.func @transform_5(%arg0: i32, %arg1: i32) -> (i32, i32) {
    %c0_i32 = arith.constant 0 : i32
    return %arg0, %arg1 : i32, i32
  }
}

</mosaic_0001>

<bundles_post_ra>
// kernel: tpu_custom_call.1
= control target key start
LH: loop header
LB: loop body
LE: loop exit
PB: predicated region body
PF: predicated region fallthrough
CT: control target
= control target key end

     0   :  { %vm74_vm0 = vcmask 523264   ;;  %s2896_s0 = inlined_call_operand.vmem [shape: bf16[128,64], index: 0, kind: input, shape index: {}]   ;;  %s2897_s1 = inlined_call_operand.vmem [shape: bf16[64,128], index: 1, kind: input, shape index: {}]   ;;  %s2898_s2 = inlined_call_operand.vmem [shape: f32[1,128], index: 2, kind: input, shape index: {}]   ;;  %s2899_s3 = inlined_call_operand.vmem [shape: bf16[64,128], index: 3, kind: input, shape index: {}]   ;;  %s2900_s4 = inlined_call_operand.vmem [shape: f32[1,128], index: 4, kind: input, shape index: {}]   ;;  %s2901_s5 = inlined_call_operand.hbm [shape: bf16[128,128], index: 5, kind: output, shape index: {}]  }
   0x1   :  { %v1824_v0 = vld [vmem:[%s2896_s0 + $0x28] sm:$0xff]   ;;  %v1829_v1 = vld [vmem:[%s2896_s0 + $0x20] sm:$0xff]   ;;  %v1858_v17 = vld [vmem:[%s2896_s0 + $0x30] sm:$0xff]  }
   0x2   :  { %v1834_v2 = vld [vmem:[%s2896_s0] sm:$0xff]   ;;  %v1456_v3 = vunpack.c.l.bf16 %v1824_v0  ;;  %v1452_v4 = vunpack.c.l.bf16 %v1829_v1  ;;  %v1457_v6 = vunpack.c.h.bf16 %v1824_v0  ;;  %v1453_v10 = vunpack.c.h.bf16 %v1829_v1  ;;  %v1863_v18 = vld [vmem:[%s2896_s0 + $0x8] sm:$0xff]  }
   0x3   :  { %v1436_v5 = vunpack.c.l.bf16 %v1834_v2  ;;  %v1437_v11 = vunpack.c.h.bf16 %v1834_v2 }
   0x4   :  { %v68_v7 = vand.u32 2147483647, %v1456_v3  ;;  %v66_v8 = vand.u32 2147483647, %v1452_v4  ;;  %v69_v15 = vand.u32 2147483647, %v1457_v6 }
   0x5   :  { %v58_v9 = vand.u32 2147483647, %v1436_v5  ;;  %v67_v16 = vand.u32 2147483647, %v1453_v10  ;;  %v59_v19 = vand.u32 2147483647, %v1437_v11 }
   0x6   :  { %v105_v12 = vsel %vm74_vm0, %v68_v7, -inf  ;;  %v99_v13 = vsel %vm74_vm0, %v66_v8, -inf }
   0x7   :  { %v75_v14 = vsel %vm74_vm0, %v58_v9, -inf  ;;  %106 = vmax.xlane.f32.xlu2 %v105_v12  ;;  %100 = vmax.xlane.f32.xlu0 %v99_v13 }
   0x8   :  { %76 = vmax.xlane.f32.xlu1 %v75_v14 }
   0x9   :  { %10 = vsyncpa [#allocation5], 0  ;;  %v108_v20 = vsel %vm74_vm0, %v69_v15, -inf  ;;  %v102_v21 = vsel %vm74_vm0, %v67_v16, -inf  ;;  %v1460_v22 = vunpack.c.l.bf16 %v1858_v17  ;;  %v1440_v23 = vunpack.c.l.bf16 %v1863_v18  ;;  %v1882_v29 = vld [vmem:[%s2896_s0 + $0x10] sm:$0xff]   ;;  %v1899_v39 = vld [vmem:[%s2896_s0 + $0x18] sm:$0xff]  }
   0xa   :  { %v78_v24 = vsel %vm74_vm0, %v59_v19, -inf  ;;  %v1441_v25 = vunpack.c.h.bf16 %v1863_v18  ;;  %v1445_v32 = vunpack.c.h.bf16 %v1882_v29  ;;  %v1461_v33 = vunpack.c.h.bf16 %v1858_v17  ;;  %v1904_v40 = vld [vmem:[%s2896_s0 + $0x38] sm:$0xff]   ;;  %s1310_s28 = sshll.u32 %s2901_s5, 4  ;;  %s1789_s29 = smov 64   ;;  %s1311_s28 = int_to_ptr.hbm [resolvable:$true] %s1310_s28 }
   0xb   :  { %v70_v26 = vand.u32 2147483647, %v1460_v22  ;;  %v60_v27 = vand.u32 2147483647, %v1440_v23  ;;  %v1444_v35 = vunpack.c.l.bf16 %v1882_v29  ;;  %v1448_v43 = vunpack.c.l.bf16 %v1899_v39  ;;  %s1790_s30 = smov 4  }
   0xc   :  { %v61_v28 = vand.u32 2147483647, %v1441_v25  ;;  %v63_v36 = vand.u32 2147483647, %v1445_v32  ;;  %v71_v37 = vand.u32 2147483647, %v1461_v33  ;;  %v1464_v44 = vunpack.c.l.bf16 %v1904_v40 }
   0xd   :  { %v111_v30 = vsel %vm74_vm0, %v70_v26, -inf  ;;  %v81_v31 = vsel %vm74_vm0, %v60_v27, -inf  ;;  %v62_v38 = vand.u32 2147483647, %v1444_v35  ;;  %v1465_v46 = vunpack.c.h.bf16 %v1904_v40 }
   0xe   :  { %v84_v34 = vsel %vm74_vm0, %v61_v28, -inf  ;;  %v90_v41 = vsel %vm74_vm0, %v63_v36, -inf  ;;  %v114_v42 = vsel %vm74_vm0, %v71_v37, -inf  ;;  %v64_v47 = vand.u32 2147483647, %v1448_v43 }
   0xf   :  { %109 = vmax.xlane.f32.xlu2 %v108_v20  ;;  %103 = vmax.xlane.f32.xlu0 %v102_v21  ;;  %v87_v45 = vsel %vm74_vm0, %v62_v38, -inf  ;;  %v72_v48 = vand.u32 2147483647, %v1464_v44  ;;  %v73_v49 = vand.u32 2147483647, %v1465_v46  ;;  %v1449_v52 = vunpack.c.h.bf16 %v1899_v39 }
  0x10   :  { %79 = vmax.xlane.f32.xlu1 %v78_v24  ;;  %v93_v50 = vsel %vm74_vm0, %v64_v47, -inf  ;;  %vm508_vm4 = vcmask 7168  }
  0x11   :  { %v117_v51 = vsel %vm74_vm0, %v72_v48, -inf  ;;  %v120_v53 = vsel %vm74_vm0, %v73_v49, -inf  ;;  %v65_v54 = vand.u32 2147483647, %v1449_v52 }
  0x13   :  { %v96_v55 = vsel %vm74_vm0, %v65_v54, -inf }
  0x17   :  { %112 = vmax.xlane.f32.xlu2 %v111_v30  ;;  %82 = vmax.xlane.f32.xlu0 %v81_v31 }
  0x18   :  { %85 = vmax.xlane.f32.xlu1 %v84_v34 }
  0x1f   :  { %91 = vmax.xlane.f32.xlu2 %v90_v41  ;;  %115 = vmax.xlane.f32.xlu0 %v114_v42 }
  0x20   :  { %88 = vmax.xlane.f32.xlu1 %v87_v45 }
  0x27   :  { %94 = vmax.xlane.f32.xlu2 %v93_v50  ;;  %118 = vmax.xlane.f32.xlu0 %v117_v51 }
  0x28   :  { %121 = vmax.xlane.f32.xlu1 %v120_v53 }
  0x2f   :  { %97 = vmax.xlane.f32.xlu0 %v96_v55 }
  0x7a   :  { %v107_v56 = vpop.xlane.xlu2 %106  ;;  %v101_v57 = vpop.xlane.xlu0 %100 }
  0x7b   :  { %vm133_vm1 = vcmp.eq.f32.partialorder %v107_v56, 0.0  ;;  %vm131_vm2 = vcmp.eq.f32.partialorder %v101_v57, 0.0  ;;  %v77_v58 = vpop.xlane.xlu1 %76 }
  0x7c   :  { %v149_v59 = vsel %vm133_vm1, 1.0, %v107_v56  ;;  %v1925_v60 = vsel %vm131_vm2, 1.0, %v101_v57  ;;  %vm123_vm3 = vcmp.eq.f32.partialorder %v77_v58, 0.0 }
  0x7d   :  { %1665 = vrcp.f32 %v149_v59  ;;  %v469_v61 = vmul.f32 0.14285715, %v149_v59  ;;  %v314_v62 = vand.u32 2147483647, %v149_v59  ;;  %v467_v63 = vmul.f32 0.14285715, %v1925_v60 }
  0x7e   :  { %1667 = vrcp.f32 %v1925_v60  ;;  %v316_v7 = vand.u32 2147483648, %v149_v59  ;;  %v1930_v8 = vsel %vm123_vm3, 1.0, %v77_v58  ;;  %v284_v9 = vand.u32 2147483647, %v1925_v60 }
  0x7f   :  { %519 = vst.msk [vmem:[#allocation3 + $0x50] sm:$0xff] %vm508_vm4, %v469_v61  ;;  %1669 = vrcp.f32 %v1930_v8  ;;  %vm310_vm5 = vweird.f32 %v149_v59  ;;  %v459_v12 = vmul.f32 0.14285715, %v1930_v8  ;;  %vm1936_vm6 = vcmp.eq.f32.partialorder %v314_v62, 8.507059e+37 }
  0x80   :  { %517 = vst.msk [vmem:[#allocation3 + $0x40] sm:$0xff] %vm508_vm4, %v467_v63  ;;  %vm280_vm7 = vweird.f32 %v1925_v60  ;;  %v286_v19 = vand.u32 2147483648, %v1925_v60  ;;  %v317_v24 = vor.u32 1.1754944e-38, %v316_v7  ;;  %vm1946_vm10 = vcmp.eq.f32.partialorder %v284_v9, 8.507059e+37 }
  0x81   :  { %509 = vst.msk [vmem:[#allocation3] sm:$0xff] %vm508_vm4, %v459_v12  ;;  %v164_v30 = vand.u32 2147483647, %v1930_v8  ;;  %v166_v34 = vand.u32 2147483648, %v1930_v8  ;;  %vm160_vm12 = vweird.f32 %v1930_v8 }
  0x82   :  { %v110_v13 = vpop.xlane.xlu2 %109  ;;  %v104_v14 = vpop.xlane.xlu0 %103  ;;  %v287_v42 = vor.u32 1.1754944e-38, %v286_v19 }
  0x83   :  { %v1666_v15 = vpop.eup %1665  ;;  %vm134_vm8 = vcmp.eq.f32.partialorder %v110_v13, 0.0  ;;  %vm132_vm9 = vcmp.eq.f32.partialorder %v104_v14, 0.0  ;;  %v80_v37 = vpop.xlane.xlu1 %79  ;;  %vm1967_vm1 = vcmp.eq.f32.partialorder %v164_v30, 8.507059e+37  ;;  %v167_v57 = vor.u32 1.1754944e-38, %v166_v34 }
  0x84   :  { %v1668_v20 = vpop.eup %1667  ;;  %v306_v21 = vmul.f32 %v1666_v15, %v149_v59  ;;  %v1943_v26 = vsel %vm134_vm8, 1.0, %v110_v13  ;;  %vm311_vm11 = vweird.f32 %v1666_v15  ;;  %v1955_v45 = vsel %vm132_vm9, 1.0, %v104_v14 }
  0x85   :  { %v276_v27 = vmul.f32 %v1668_v20, %v1925_v60  ;;  %1671 = vrcp.f32 %v1943_v26  ;;  %v470_v36 = vmul.f32 0.14285715, %v1943_v26  ;;  %v1670_v38 = vpop.eup %1669  ;;  %vm281_vm13 = vweird.f32 %v1668_v20  ;;  %vm1961_vm14 = vmor %vm310_vm5, %vm311_vm11 }
  0x86   :  { %v307_v31 = vsub.f32 1.0, %v306_v21  ;;  %v156_v48 = vmul.f32 %v1670_v38, %v1930_v8  ;;  %v329_v49 = vand.u32 2147483647, %v1943_v26  ;;  %v331_v53 = vand.u32 2147483648, %v1943_v26  ;;  %vm282_vm5 = vmor %vm280_vm7, %vm281_vm13 }
  0x87   :  { %v277_v41 = vsub.f32 1.0, %v276_v27  ;;  %520 = vst.msk [vmem:[#allocation3 + $0x58] sm:$0xff] %vm508_vm4, %v470_v36  ;;  %1673 = vrcp.f32 %v1955_v45  ;;  %vm124_vm15 = vcmp.eq.f32.partialorder %v80_v37, 0.0  ;;  %vm161_vm2 = vweird.f32 %v1670_v38 }
  0x88   :  { %v308_v47 = vmul.f32 %v1666_v15, %v307_v31  ;;  %v157_v55 = vsub.f32 1.0, %v156_v48  ;;  %vm325_vm3 = vweird.f32 %v1943_v26  ;;  %v468_v61 = vmul.f32 0.14285715, %v1955_v45  ;;  %vm162_vm7 = vmor %vm160_vm12, %vm161_vm2 }
  0x89   :  { %v278_v51 = vmul.f32 %v1668_v20, %v277_v41  ;;  %vm1982_vm8 = vcmp.eq.f32.partialorder %v329_v49, 8.507059e+37  ;;  %v1986_v12 = vsel %vm124_vm15, 1.0, %v80_v37  ;;  %v332_v19 = vor.u32 1.1754944e-38, %v331_v53 }
  0x8a   :  { %v309_v54 = vadd.f32 %v1666_v15, %v308_v47  ;;  %v158_v63 = vmul.f32 %v1670_v38, %v157_v55  ;;  %518 = vst.msk [vmem:[#allocation3 + $0x48] sm:$0xff] %vm508_vm4, %v468_v61  ;;  %v299_v16 = vand.u32 2147483647, %v1955_v45  ;;  %1675 = vrcp.f32 %v1986_v12  ;;  %v2023_v53 = vpop.xlane.xlu2 %112 }
  0x8b   :  { %v1971_v58 = vpop.eup %1671  ;;  %v279_v59 = vadd.f32 %v1668_v20, %v278_v51  ;;  %vm295_vm9 = vweird.f32 %v1955_v45  ;;  %vm175_vm15 = vweird.f32 %v1986_v12  ;;  %vm135_vm2 = vcmp.eq.f32.partialorder %v2023_v53, 0.0 }
  0x8c   :  { %v313_v62 = vsel %vm1961_vm14, %v1666_v15, %v309_v54  ;;  %v321_v7 = vmul.f32 %v1971_v58, %v1943_v26  ;;  %v301_v15 = vand.u32 2147483648, %v1955_v45  ;;  %v159_v27 = vadd.f32 %v1670_v38, %v158_v63 }
  0x8d   :  { %v318_v13 = vsel %vm1936_vm6, %v317_v24, %v313_v62  ;;  %v283_v14 = vsel %vm282_vm5, %v1668_v20, %v279_v59  ;;  %v1994_v31 = vpop.eup %1673  ;;  %vm326_vm6 = vweird.f32 %v1971_v58  ;;  %vm2027_vm12 = vcmp.eq.f32.partialorder %v299_v16, 8.507059e+37 }
  0x8e   :  { %v319_v60 = vmul.f32 7.0, %v318_v13  ;;  %v288_v21 = vsel %vm1946_vm10, %v287_v42, %v283_v14  ;;  %v322_v30 = vsub.f32 1.0, %v321_v7  ;;  %v163_v24 = vsel %vm162_vm7, %v1670_v38, %v159_v27  ;;  %vm2017_vm10 = vmor %vm325_vm3, %vm326_vm6 }
  0x8f   :  { %v289_v34 = vmul.f32 7.0, %v288_v21  ;;  %v291_v36 = vmul.f32 %v1994_v31, %v1955_v45  ;;  %v168_v8 = vsel %vm1967_vm1, %v167_v57, %v163_v24  ;;  %v302_v41 = vor.u32 1.1754944e-38, %v301_v15 }
  0x90   :  { %v405_v20 = vmul.f32 %v1456_v3, %v319_v60  ;;  %v323_v28 = vmul.f32 %v1971_v58, %v322_v30  ;;  %v179_v42 = vand.u32 2147483647, %v1986_v12  ;;  %v169_v3 = vmul.f32 7.0, %v168_v8  ;;  %v1676_v59 = vpop.eup %1675 }
  0x91   :  { %v403_v37 = vmul.f32 %v1452_v4, %v289_v34  ;;  %vm296_vm11 = vweird.f32 %v1994_v31  ;;  %v292_v57 = vsub.f32 1.0, %v291_v36  ;;  %vm491_vm1 = vcmask 519168  }
  0x92   :  { %v1608_v47 = vand.u32 2147483647, %v405_v20  ;;  %v1610_v48 = vcvt.f32.s32 %v405_v20  ;;  %v1613_v4 = vand.u32 2147483648, %v405_v20  ;;  %v324_v51 = vadd.f32 %v1971_v58, %v323_v28 }
  0x93   :  { %v1592_v49 = vand.u32 2147483647, %v403_v37  ;;  %v1594_v50 = vcvt.f32.s32 %v403_v37  ;;  %v1597_v55 = vand.u32 2147483648, %v403_v37  ;;  %v395_v56 = vmul.f32 %v1436_v5, %v169_v3 }
  0x94   :  { %v1611_v54 = vcvt.s32.f32 %v1610_v48  ;;  %vm2031_vm13 = vcmp.lt.f32.partialorder %v1608_v47, 8388608.0  ;;  %v328_v7 = vsel %vm2017_vm10, %v1971_v58, %v324_v51  ;;  %v181_v15 = vand.u32 2147483648, %v1986_v12 }
  0x95   :  { %vm2035_vm14 = vcmp.lt.f32.partialorder %v1592_v49, 8388608.0  ;;  %v1595_v63 = vcvt.s32.f32 %v1594_v50  ;;  %v1528_v13 = vand.u32 2147483647, %v395_v56  ;;  %v1530_v14 = vcvt.f32.s32 %v395_v56 }
  0x96   :  { %v1612_v5 = vand.u32 2147483647, %v1611_v54  ;;  %v333_v21 = vsel %vm1982_vm8, %v332_v19, %v328_v7  ;;  %v293_v27 = vmul.f32 %v1994_v31, %v292_v57  ;;  %v171_v30 = vmul.f32 %v1676_v59, %v1986_v12  ;;  %vm297_vm8 = vmor %vm295_vm9, %vm296_vm11 }
  0x97   :  { %v1596_v60 = vand.u32 2147483647, %v1595_v63  ;;  %vm2049_vm3 = vcmp.eq.f32.partialorder %v179_v42, 8.507059e+37  ;;  %v1531_v16 = vcvt.s32.f32 %v1530_v14  ;;  %v1533_v24 = vand.u32 2147483648, %v395_v56 }
  0x98   :  { %v1614_v34 = vor.u32 %v1613_v4, %v1612_v5  ;;  %v334_v28 = vmul.f32 7.0, %v333_v21  ;;  %vm2053_vm5 = vcmp.lt.f32.partialorder %v1528_v13, 8388608.0  ;;  %v294_v9 = vadd.f32 %v1994_v31, %v293_v27 }
  0x99   :  { %v1598_v36 = vor.u32 %v1597_v55, %v1596_v60  ;;  %v172_v19 = vsub.f32 1.0, %v171_v30  ;;  %v1532_v48 = vand.u32 2147483647, %v1531_v16  ;;  %vm176_vm7 = vweird.f32 %v1676_v59 }
  0x9a   :  { %v1615_v47 = vsel %vm2031_vm13, %v1614_v34, %v405_v20  ;;  %v406_v42 = vmul.f32 %v1457_v6, %v334_v28  ;;  %v298_v4 = vsel %vm297_vm8, %v1994_v31, %v294_v9  ;;  %v182_v54 = vor.u32 1.1754944e-38, %v181_v15  ;;  %vm177_vm6 = vmor %vm175_vm15, %vm176_vm7 }
  0x9b   :  { %v437_v3 = vmax.f32 %v1615_v47, -8.0  ;;  %v1599_v38 = vsel %vm2035_vm14, %v1598_v36, %v403_v37  ;;  %v173_v49 = vmul.f32 %v1676_v59, %v172_v19  ;;  %v1534_v51 = vor.u32 %v1533_v24, %v1532_v48 }
  0x9c   :  { %v435_v50 = vmax.f32 %v1599_v38, -8.0  ;;  %v1618_v20 = vcvt.f32.s32 %v406_v42  ;;  %v1616_v0 = vand.u32 2147483647, %v406_v42  ;;  %v303_v6 = vsel %vm2027_vm12, %v302_v41, %v298_v4 }
  0x9d   :  { %v453_v55 = vmin.f32 %v437_v3, 7.0  ;;  %v174_v57 = vadd.f32 %v1676_v59, %v173_v49  ;;  %v1535_v61 = vsel %vm2053_vm5, %v1534_v51, %v395_v56  ;;  %v1621_v62 = vand.u32 2147483648, %v406_v42 }
  0x9e   :  { %v451_v45 = vmin.f32 %v435_v50, 7.0  ;;  %v1619_v63 = vcvt.s32.f32 %v1618_v20  ;;  %v427_v37 = vmax.f32 %v1535_v61, -8.0  ;;  %v304_v7 = vmul.f32 7.0, %v303_v6 }
  0x9f   :  { %v485_v31 = vpack.c.bf16 %v453_v55, %v453_v55  ;;  %v178_v5 = vsel %vm177_vm6, %v1676_v59, %v174_v57  ;;  %v460_v26 = vmul.f32 0.14285715, %v1986_v12  ;;  %v151_v21 = vsel %vm135_vm2, 1.0, %v2023_v53  ;;  %v83_v12 = vpop.xlane.xlu0 %82 }
  0xa0   :  { %v483_v13 = vpack.c.bf16 %v451_v45, %v451_v45  ;;  %v1620_v14 = vand.u32 2147483647, %v1619_v63  ;;  %v183_v41 = vsel %vm2049_vm3, %v182_v54, %v178_v5  ;;  %v443_v56 = vmin.f32 %v427_v37, 7.0 }
  0xa1   :  { %502 = vst.msk [vmem:[#allocation2 + $0x28] sm:$0xf] %vm491_vm1, %v485_v31  ;;  %v404_v15 = vmul.f32 %v1453_v10, %v304_v7  ;;  %v184_v60 = vmul.f32 7.0, %v183_v41  ;;  %1677 = vrcp.f32 %v151_v21  ;;  %vm1617_vm9 = vcmp.lt.f32.partialorder %v1616_v0, 8388608.0  ;;  %v86_v10 = vpop.xlane.xlu1 %85  ;;  %v92_v31 = vpop.xlane.xlu2 %91 }
  0xa2   :  { %500 = vst.msk [vmem:[#allocation2 + $0x20] sm:$0xf] %vm491_vm1, %v483_v13  ;;  %v1622_v59 = vor.u32 %v1621_v62, %v1620_v14  ;;  %v475_v27 = vpack.c.bf16 %v443_v56, %v443_v56  ;;  %vm340_vm10 = vweird.f32 %v151_v21  ;;  %v471_v24 = vmul.f32 0.14285715, %v151_v21 }
  0xa3   :  { %v1602_v30 = vcvt.f32.s32 %v404_v15  ;;  %510 = vst.msk [vmem:[#allocation3 + $0x8] sm:$0xff] %vm508_vm4, %v460_v26  ;;  %v1600_v34 = vand.u32 2147483647, %v404_v15  ;;  %v396_v1 = vmul.f32 %v1437_v11, %v184_v60  ;;  %v1605_v28 = vand.u32 2147483648, %v404_v15  ;;  %v768_v26 = vld [vmem:[#allocation3] sm:$0xff] }
  0xa4   :  { %v1623_v58 = vsel %vm1617_vm9, %v1622_v59, %v406_v42  ;;  %492 = vst.msk [vmem:[#allocation2] sm:$0xf] %vm491_vm1, %v475_v27  ;;  %v344_v8 = vand.u32 2147483647, %v151_v21  ;;  %v346_v9 = vand.u32 2147483648, %v151_v21  ;;  %vm125_vm11 = vcmp.eq.f32.partialorder %v83_v12, 0.0 }
  0xa5   :  { %v438_v16 = vmax.f32 %v1623_v58, -8.0  ;;  %v1603_v53 = vcvt.s32.f32 %v1602_v30  ;;  %v1538_v36 = vcvt.f32.s32 %v396_v1  ;;  %521 = vst.msk [vmem:[#allocation3 + $0x60] sm:$0xff] %vm508_vm4, %v471_v24  ;;  %vm126_vm12 = vcmp.eq.f32.partialorder %v86_v10, 0.0 }
  0xa6   :  { %vm2091_vm13 = vcmp.lt.f32.partialorder %v1600_v34, 8388608.0  ;;  %v1536_v11 = vand.u32 2147483647, %v396_v1  ;;  %v2095_v3 = vsel %vm125_vm11, 1.0, %v83_v12  ;;  %v2097_v50 = vsel %vm126_vm12, 1.0, %v86_v10 }
  0xa7   :  { %v454_v19 = vmin.f32 %v438_v16, 7.0  ;;  %v1604_v47 = vand.u32 2147483647, %v1603_v53  ;;  %v1678_v48 = vpop.eup %1677  ;;  %v1539_v42 = vcvt.s32.f32 %v1538_v36  ;;  %v1541_v20 = vand.u32 2147483648, %v396_v1  ;;  %v116_v37 = vpop.xlane.xlu0 %115 }
  0xa8   :  { %v336_v49 = vmul.f32 %v1678_v48, %v151_v21  ;;  %1679 = vrcp.f32 %v2095_v3  ;;  %v194_v54 = vand.u32 2147483647, %v2095_v3  ;;  %vm341_vm14 = vweird.f32 %v1678_v48 }
  0xa9   :  { %v486_v38 = vpack.c.bf16 %v454_v19, %v454_v19  ;;  %v1606_v4 = vor.u32 %v1605_v28, %v1604_v47  ;;  %v1540_v51 = vand.u32 2147483647, %v1539_v42  ;;  %v461_v6 = vmul.f32 0.14285715, %v2095_v3  ;;  %vm2114_vm5 = vmor %vm340_vm10, %vm341_vm14  ;;  %v89_v47 = vpop.xlane.xlu1 %88 }
  0xaa   :  { %v337_v0 = vsub.f32 1.0, %v336_v49  ;;  %vm2105_vm15 = vcmp.eq.f32.partialorder %v344_v8, 8.507059e+37  ;;  %1681 = vrcp.f32 %v2097_v50  ;;  %vm1537_vm2 = vcmp.lt.f32.partialorder %v1536_v11, 8388608.0  ;;  %v769_v56 = vld [vmem:[#allocation3 + $0x8] sm:$0xff] }
  0xab   :  { %503 = vst.msk [vmem:[#allocation2 + $0x2c] sm:$0xf] %vm491_vm1, %v486_v38  ;;  %v1607_v55 = vsel %vm2091_vm13, %v1606_v4, %v404_v15  ;;  %v1542_v45 = vor.u32 %v1541_v20, %v1540_v51  ;;  %v347_v62 = vor.u32 1.1754944e-38, %v346_v9  ;;  %vm190_vm3 = vweird.f32 %v2095_v3 }
  0xac   :  { %v436_v57 = vmax.f32 %v1607_v55, -8.0  ;;  %v338_v63 = vmul.f32 %v1678_v48, %v337_v0  ;;  %511 = vst.msk [vmem:[#allocation3 + $0x10] sm:$0xff] %vm508_vm4, %v461_v6  ;;  %v196_v14 = vand.u32 2147483648, %v2095_v3  ;;  %v462_v41 = vmul.f32 0.14285715, %v2097_v50 }
  0xad   :  { %v1543_v5 = vsel %vm1537_vm2, %v1542_v45, %v396_v1  ;;  %vm2120_vm8 = vcmp.eq.f32.partialorder %v194_v54, 8.507059e+37  ;;  %v209_v21 = vand.u32 2147483647, %v2097_v50  ;;  %v1787_v12 = vmov 0  }
  0xae   :  { %v452_v7 = vmin.f32 %v436_v57, 7.0  ;;  %v428_v15 = vmax.f32 %v1543_v5, -8.0  ;;  %v339_v60 = vadd.f32 %v1678_v48, %v338_v63  ;;  %v1680_v27 = vpop.eup %1679  ;;  %512 = vst.msk [vmem:[#allocation3 + $0x18] sm:$0xff] %vm508_vm4, %v462_v41  ;;  %1660 = vset.pattern.permute.xlu1 %v1787_v12  ;;  %vm128_vm7 = vcmp.eq.f32.partialorder %v92_v31, 0.0  ;;  %1661 = vset.pattern.permute.xlu2 %v1787_v12 }
  0xaf   :  { %vm136_vm6 = vcmp.eq.f32.partialorder %v116_v37, 0.0  ;;  %v186_v1 = vmul.f32 %v1680_v27, %v2095_v3  ;;  %v211_v10 = vand.u32 2147483648, %v2097_v50  ;;  %786 = vperm.xlu1 %1660, %v768_v26   ;;  %791 = vperm.xlu2 %1661, %v769_v56   ;;  %vm191_vm9 = vweird.f32 %v1680_v27  ;;  %v1427_v26 = vld [vmem:[%s2897_s1 + $0x8] sm:$0xff] }
  0xb0   :  { %v484_v30 = vpack.c.bf16 %v452_v7, %v452_v7  ;;  %v444_v58 = vmin.f32 %v428_v15, 7.0  ;;  %v343_v34 = vsel %vm2114_vm5, %v1678_v48, %v339_v60  ;;  %v2130_v16 = vpop.eup %1681  ;;  %v2135_v24 = vsel %vm128_vm7, 1.0, %v92_v31  ;;  %1662 = vset.pattern.permute.xlu0 %v1787_v12  ;;  %vm2153_vm12 = vmor %vm190_vm3, %vm191_vm9  ;;  %v2207_v12 = vpop.xlane.xlu2 %94 }
  0xb1   :  { %v348_v53 = vsel %vm2105_vm15, %v347_v62, %v343_v34  ;;  %v2137_v28 = vsel %vm136_vm6, 1.0, %v116_v37  ;;  %v187_v9 = vsub.f32 1.0, %v186_v1  ;;  %v201_v19 = vmul.f32 %v2130_v16, %v2097_v50 }
  0xb2   :  { %501 = vst.msk [vmem:[#allocation2 + $0x24] sm:$0xf] %vm491_vm1, %v484_v30  ;;  %v476_v36 = vpack.c.bf16 %v444_v58, %v444_v58  ;;  %v349_v8 = vmul.f32 7.0, %v348_v53  ;;  %v197_v48 = vor.u32 1.1754944e-38, %v196_v14  ;;  %vm205_vm10 = vweird.f32 %v2097_v50  ;;  %v777_v58 = vld [vmem:[#allocation3 + $0x48] sm:$0xff] }
  0xb3   :  { %vm2142_vm11 = vcmp.eq.f32.partialorder %v209_v21, 8.507059e+37  ;;  %1683 = vrcp.f32 %v2135_v24  ;;  %v770_v11 = vld [vmem:[#allocation3 + $0x10] sm:$0xff]  ;;  %v188_v38 = vmul.f32 %v1680_v27, %v187_v9  ;;  %v202_v4 = vsub.f32 1.0, %v201_v19 }
  0xb4   :  { %493 = vst.msk [vmem:[#allocation2 + $0x4] sm:$0xf] %vm491_vm1, %v476_v36  ;;  %v407_v42 = vmul.f32 %v1460_v22, %v349_v8  ;;  %v212_v49 = vor.u32 1.1754944e-38, %v211_v10  ;;  %796 = vperm.xlu0 %1662, %v770_v11   ;;  %vm206_vm13 = vweird.f32 %v2130_v16  ;;  %v464_v20 = vmul.f32 0.14285715, %v2135_v24 }
  0xb5   :  { %1685 = vrcp.f32 %v2137_v28  ;;  %vm127_vm14 = vcmp.eq.f32.partialorder %v89_v47, 0.0  ;;  %v189_v22 = vadd.f32 %v1680_v27, %v188_v38  ;;  %v239_v55 = vand.u32 2147483647, %v2135_v24  ;;  %vm2171_vm15 = vmor %vm205_vm10, %vm206_vm13  ;;  %v771_v15 = vld [vmem:[#allocation3 + $0x18] sm:$0xff] }
  0xb6   :  { %v1626_v54 = vcvt.f32.s32 %v407_v42  ;;  %v241_v0 = vand.u32 2147483648, %v2135_v24  ;;  %v1624_v6 = vand.u32 2147483647, %v407_v42  ;;  %v1629_v57 = vand.u32 2147483648, %v407_v42  ;;  %514 = vst.msk [vmem:[#allocation3 + $0x28] sm:$0xff] %vm508_vm4, %v464_v20 }
  0xb7   :  { %v203_v3 = vmul.f32 %v2130_v16, %v202_v4  ;;  %v361_v45 = vand.u32 2147483648, %v2137_v28  ;;  %v193_v63 = vsel %vm2153_vm12, %v1680_v27, %v189_v22  ;;  %v359_v31 = vand.u32 2147483647, %v2137_v28  ;;  %801 = vperm.xlu2 %1661, %v771_v15  }
  0xb8   :  { %v1627_v61 = vcvt.s32.f32 %v1626_v54  ;;  %v472_v37 = vmul.f32 0.14285715, %v2137_v28  ;;  %v198_v5 = vsel %vm2120_vm8, %v197_v48, %v193_v63  ;;  %vm235_vm2 = vweird.f32 %v2135_v24  ;;  %v1433_v48 = vld [vmem:[%s2899_s3 + $0x18] sm:$0xff] }
  0xb9   :  { %v2177_v7 = vpop.eup %1683  ;;  %v204_v13 = vadd.f32 %v2130_v16, %v203_v3  ;;  %vm355_vm3 = vweird.f32 %v2137_v28  ;;  %v199_v14 = vmul.f32 7.0, %v198_v5  ;;  %vm2186_vm5 = vcmp.eq.f32.partialorder %v239_v55, 8.507059e+37  ;;  %723 = vmatpush.bf16.msra.mxu1 %v1433_v48  ;;  %1524 = vmatpush.bf16.msra.mxu3 %v1433_v48 }
  0xba   :  { %v1628_v50 = vand.u32 2147483647, %v1627_v61  ;;  %v231_v41 = vmul.f32 %v2177_v7, %v2135_v24  ;;  %v2190_v56 = vor.u32 1.1754944e-38, %v241_v0  ;;  %522 = vst.msk [vmem:[#allocation3 + $0x68] sm:$0xff] %vm508_vm4, %v472_v37  ;;  %vm2195_vm8 = vcmp.lt.f32.partialorder %v1624_v6, 8388608.0  ;;  %v1432_v24 = vld [vmem:[%s2899_s3 + $0x10] sm:$0xff] }
  0xbb   :  { %v2193_v60 = vpop.eup %1685  ;;  %v208_v27 = vsel %vm2171_vm15, %v2130_v16, %v204_v13  ;;  %v2202_v30 = vor.u32 1.1754944e-38, %v361_v45  ;;  %v2205_v21 = vsel %vm127_vm14, 1.0, %v89_v47  ;;  %v2211_v1 = vmul.f32 %v1440_v23, %v199_v14  ;;  %v1429_v47 = vld [vmem:[%s2897_s1 + $0x18] sm:$0xff]  ;;  %v1418_v17 = vld [vmem:[#allocation2] sm:$0xff] }
  0xbc   :  { %v1630_v34 = vor.u32 %v1629_v57, %v1628_v50  ;;  %v213_v10 = vsel %vm2142_vm11, %v212_v49, %v208_v27  ;;  %v232_v53 = vsub.f32 1.0, %v231_v41  ;;  %vm2215_vm7 = vcmp.eq.f32.partialorder %v359_v31, 8.507059e+37  ;;  %831 = vperm.xlu0 %1662, %v777_v58   ;;  %642 = vmatpush.bf16.msra.mxu0 %v1429_v47  ;;  %v1428_v57 = vld [vmem:[%s2897_s1 + $0x10] sm:$0xff] }
  0xbd   :  { %v214_v36 = vmul.f32 7.0, %v213_v10  ;;  %vm236_vm6 = vweird.f32 %v2177_v7  ;;  %v351_v8 = vmul.f32 %v2193_v60, %v2137_v28  ;;  %1687 = vrcp.f32 %v2205_v21  ;;  %1520 = vmatpush.bf16.msra.mxu2 %v1429_v47  ;;  %v773_v37 = vld [vmem:[#allocation3 + $0x28] sm:$0xff]  ;;  %724 = vmatpush.bf16.msra.mxu1 %v1432_v24 }
  0xbe   :  { %v1631_v23 = vsel %vm2195_vm8, %v1630_v34, %v407_v42  ;;  %v1544_v9 = vand.u32 2147483647, %v2211_v1  ;;  %v1546_v19 = vcvt.f32.s32 %v2211_v1  ;;  %vm129_vm9 = vcmp.eq.f32.partialorder %v2207_v12, 0.0  ;;  %vm2251_vm12 = vmor %vm235_vm2, %vm236_vm6  ;;  %1525 = vmatpush.bf16.msra.mxu3 %v1432_v24 }
  0xbf   :  { %v439_v2 = vmax.f32 %v1631_v23, -8.0  ;;  %v2236_v11 = vmul.f32 %v1441_v25, %v214_v36  ;;  %v233_v42 = vmul.f32 %v2177_v7, %v232_v53  ;;  %v352_v38 = vsub.f32 1.0, %v351_v8  ;;  %811 = vperm.xlu2 %1661, %v773_v37  }
  0xc0   :  { %vm2239_vm10 = vcmp.lt.f32.partialorder %v1544_v9, 8388608.0  ;;  %v1547_v49 = vcvt.s32.f32 %v1546_v19  ;;  %v1549_v51 = vand.u32 2147483648, %v2211_v1  ;;  %vm356_vm11 = vweird.f32 %v2193_v60  ;;  %643 = vmatpush.bf16.msra.mxu0 %v1428_v57  ;;  %v780_v9 = vld [vmem:[#allocation3 + $0x60] sm:$0xff] }
  0xc1   :  { %v455_v20 = vmin.f32 %v439_v2, 7.0  ;;  %v1552_v54 = vand.u32 2147483647, %v2236_v11  ;;  %v1554_v18 = vcvt.f32.s32 %v2236_v11  ;;  %vm220_vm13 = vweird.f32 %v2205_v21  ;;  %vm2276_vm15 = vmor %vm355_vm3, %vm356_vm11  ;;  %1521 = vmatpush.bf16.msra.mxu2 %v1428_v57  ;;  %v119_v2 = vpop.xlane.xlu0 %118 }
  0xc2   :  { %v1548_v22 = vand.u32 2147483647, %v1547_v49  ;;  %v234_v55 = vadd.f32 %v2177_v7, %v233_v42  ;;  %v353_v0 = vmul.f32 %v2193_v60, %v352_v38  ;;  %v224_v6 = vand.u32 2147483647, %v2205_v21 }
  0xc3   :  { %v2265_v3 = vpop.eup %1687  ;;  %v487_v45 = vpack.c.bf16 %v455_v20, %v455_v20  ;;  %vm2267_vm14 = vcmp.lt.f32.partialorder %v1552_v54, 8388608.0  ;;  %v1555_v63 = vcvt.s32.f32 %v1554_v18  ;;  %v1557_v62 = vand.u32 2147483648, %v2236_v11 }
  0xc4   :  { %v1550_v5 = vor.u32 %v1549_v51, %v1548_v22  ;;  %v238_v13 = vsel %vm2251_vm12, %v2177_v7, %v234_v55  ;;  %v354_v50 = vadd.f32 %v2193_v60, %v353_v0  ;;  %v216_v14 = vmul.f32 %v2265_v3, %v2205_v21  ;;  %644 = vmatpush.bf16.msra.mxu0 %v1427_v26 }
  0xc5   :  { %504 = vst.msk [vmem:[#allocation2 + $0x30] sm:$0xf] %vm491_vm1, %v487_v45  ;;  %v1556_v41 = vand.u32 2147483647, %v1555_v63  ;;  %v243_v28 = vsel %vm2186_vm5, %v2190_v56, %v238_v13  ;;  %vm221_vm2 = vweird.f32 %v2265_v3  ;;  %v226_v15 = vand.u32 2147483648, %v2205_v21  ;;  %v1431_v56 = vld [vmem:[%s2899_s3 + $0x8] sm:$0xff]  ;;  %1522 = vmatpush.bf16.msra.mxu2 %v1427_v26  ;;  %846 = vperm.xlu0 %1662, %v780_v9  }
  0xc6   :  { %v1551_v7 = vsel %vm2239_vm10, %v1550_v5, %v2211_v1  ;;  %v244_v59 = vmul.f32 7.0, %v243_v28  ;;  %v358_v27 = vsel %vm2276_vm15, %v2193_v60, %v354_v50  ;;  %v217_v58 = vsub.f32 1.0, %v216_v14  ;;  %vm2328_vm3 = vmor %vm220_vm13, %vm221_vm2  ;;  %725 = vmatpush.bf16.msra.mxu1 %v1431_v56  ;;  %1526 = vmatpush.bf16.msra.mxu3 %v1431_v56  ;;  %v122_v28 = vpop.xlane.xlu1 %121 }
  0xc7   :  { %v429_v34 = vmax.f32 %v1551_v7, -8.0  ;;  %v1558_v10 = vor.u32 %v1557_v62, %v1556_v41  ;;  %v363_v1 = vsel %vm2215_vm7, %v2202_v30, %v358_v27  ;;  %v463_v53 = vmul.f32 0.14285715, %v2205_v21  ;;  %v1430_v21 = vld [vmem:[%s2899_s3] sm:$0xff] }
  0xc8   :  { %v2310_v60 = vmul.f32 %v1445_v32, %v244_v59  ;;  %v364_v36 = vmul.f32 7.0, %v363_v1  ;;  %v218_v8 = vmul.f32 %v2265_v3, %v217_v58  ;;  %v2316_v23 = vsel %vm129_vm9, 1.0, %v2207_v12 }
  0xc9   :  { %v445_v19 = vmin.f32 %v429_v34, 7.0  ;;  %v1559_v30 = vsel %vm2267_vm14, %v1558_v10, %v2236_v11  ;;  %513 = vst.msk [vmem:[#allocation3 + $0x20] sm:$0xff] %vm508_vm4, %v463_v53  ;;  %1689 = vrcp.f32 %v2316_v23  ;;  %vm2332_vm5 = vcmp.eq.f32.partialorder %v224_v6, 8.507059e+37  ;;  %v1426_v11 = vld [vmem:[%s2897_s1] sm:$0xff]  ;;  %v98_v47 = vpop.xlane.xlu0 %97 }
  0xca   :  { %v430_v32 = vmax.f32 %v1559_v30, -8.0  ;;  %v1570_v16 = vcvt.f32.s32 %v2310_v60  ;;  %v227_v48 = vor.u32 1.1754944e-38, %v226_v15  ;;  %v1568_v38 = vand.u32 2147483647, %v2310_v60  ;;  %645 = vmatpush.bf16.msra.mxu0 %v1426_v11  ;;  %1523 = vmatpush.bf16.msra.mxu2 %v1426_v11  ;;  %v1422_v6 = vld [vmem:[#allocation2 + $0x20] sm:$0xff] }
  0xcb   :  { %v477_v42 = vpack.c.bf16 %v445_v19, %v445_v19  ;;  %v408_v4 = vmul.f32 %v1461_v33, %v364_v36  ;;  %v219_v49 = vadd.f32 %v2265_v3, %v218_v8  ;;  %v1573_v54 = vand.u32 2147483648, %v2310_v60  ;;  %726 = vmatpush.bf16.msra.mxu1 %v1430_v21  ;;  %1527 = vmatpush.bf16.msra.mxu3 %v1430_v21 }
  0xcc   :  { %v446_v51 = vmin.f32 %v430_v32, 7.0  ;;  %v1571_v20 = vcvt.s32.f32 %v1570_v16  ;;  %vm250_vm8 = vweird.f32 %v2316_v23  ;;  %vm137_vm7 = vcmp.eq.f32.partialorder %v119_v2, 0.0 }
  0xcd   :  { %494 = vst.msk [vmem:[#allocation2 + $0x8] sm:$0xf] %vm491_vm1, %v477_v42  ;;  %v1634_v18 = vcvt.f32.s32 %v408_v4  ;;  %v223_v25 = vsel %vm2328_vm3, %v2265_v3, %v219_v49  ;;  %v254_v0 = vand.u32 2147483647, %v2316_v23  ;;  %vm2355_vm6 = vcmp.lt.f32.partialorder %v1568_v38, 8388608.0  ;;  %1370 = vmatmul.msk.bf16.vlgmr.msra.gmra.mxu0 %vm74_vm0, %v1418_v17  ;;  %1374 = vmatmul.msk.bf16.vlgmr.msra.gmra.mxu2 %vm74_vm0, %v1422_v6 }
  0xce   :  { %v478_v33 = vpack.c.bf16 %v446_v51, %v446_v51  ;;  %v1572_v22 = vand.u32 2147483647, %v1571_v20  ;;  %v228_v55 = vsel %vm2332_vm5, %v227_v48, %v223_v25  ;;  %v1632_v3 = vand.u32 2147483647, %v408_v4  ;;  %1394 = vmatmul.msk.bf16.vlgmr.msra.gmra.mxu1 %vm74_vm0, %v1418_v17  ;;  %1398 = vmatmul.msk.bf16.vlgmr.msra.gmra.mxu3 %vm74_vm0, %v1422_v6 }
  0xcf   :  { %v1690_v57 = vpop.eup %1689  ;;  %v1635_v45 = vcvt.s32.f32 %v1634_v18  ;;  %v229_v61 = vmul.f32 7.0, %v228_v55  ;;  %v256_v31 = vand.u32 2147483648, %v2316_v23  ;;  %v465_v37 = vmul.f32 0.14285715, %v2316_v23 }
  0xd0   :  { %495 = vst.msk [vmem:[#allocation2 + $0xc] sm:$0xf] %vm491_vm1, %v478_v33  ;;  %v1574_v63 = vor.u32 %v1573_v54, %v1572_v22  ;;  %v246_v62 = vmul.f32 %v1690_v57, %v2316_v23  ;;  %v772_v5 = vld [vmem:[#allocation3 + $0x20] sm:$0xff]  ;;  %v1637_v50 = vand.u32 2147483648, %v408_v4  ;;  %v2368_v41 = vsel %vm137_vm7, 1.0, %v119_v2 }
  0xd1   :  { %v1636_v13 = vand.u32 2147483647, %v1635_v45  ;;  %v399_v14 = vmul.f32 %v1444_v35, %v229_v61  ;;  %806 = vperm.xlu1 %1660, %v772_v5   ;;  %vm251_vm9 = vweird.f32 %v1690_v57  ;;  %515 = vst.msk [vmem:[#allocation3 + $0x30] sm:$0xff] %vm508_vm4, %v465_v37  ;;  %1691 = vrcp.f32 %v2368_v41 }
  0xd2   :  { %v1575_v15 = vsel %vm2355_vm6, %v1574_v63, %v2310_v60  ;;  %v247_v7 = vsub.f32 1.0, %v246_v62  ;;  %vm1633_vm10 = vcmp.lt.f32.partialorder %v1632_v3, 8388608.0  ;;  %v257_v26 = vor.u32 1.1754944e-38, %v256_v31  ;;  %vm2380_vm12 = vmor %vm250_vm8, %vm251_vm9  ;;  %v1423_v3 = vld [vmem:[#allocation2 + $0x28] sm:$0xff] }
  0xd3   :  { %v432_v29 = vmax.f32 %v1575_v15, -8.0  ;;  %v1638_v35 = vor.u32 %v1637_v50, %v1636_v13  ;;  %v1562_v59 = vcvt.f32.s32 %v399_v14  ;;  %v1560_v27 = vand.u32 2147483647, %v399_v14 }
  0xd4   :  { %v248_v58 = vmul.f32 %v1690_v57, %v247_v7  ;;  %vm138_vm11 = vcmp.eq.f32.partialorder %v122_v28, 0.0  ;;  %v1565_v1 = vand.u32 2147483648, %v399_v14  ;;  %vm255_vm13 = vcmp.eq.f32.partialorder %v254_v0, 8.507059e+37 }
  0xd5   :  { %v448_v56 = vmin.f32 %v432_v29, 7.0  ;;  %v1639_v34 = vsel %vm1633_vm10, %v1638_v35, %v408_v4  ;;  %v1563_v10 = vcvt.s32.f32 %v1562_v59  ;;  %vm370_vm14 = vweird.f32 %v2368_v41 }
  0xd6   :  { %v440_v60 = vmax.f32 %v1639_v34, -8.0  ;;  %v249_v36 = vadd.f32 %v1690_v57, %v248_v58  ;;  %v473_v19 = vmul.f32 0.14285715, %v2368_v41  ;;  %v2386_v30 = vsel %vm138_vm11, 1.0, %v122_v28 }
  0xd7   :  { %v480_v8 = vpack.c.bf16 %v448_v56, %v448_v56  ;;  %v1564_v9 = vand.u32 2147483647, %v1563_v10  ;;  %v1692_v32 = vpop.eup %1691  ;;  %vm2388_vm15 = vcmp.lt.f32.partialorder %v1560_v27, 8388608.0  ;;  %1693 = vrcp.f32 %v2386_v30  ;;  %v1419_v24 = vld [vmem:[#allocation2 + $0x8] sm:$0xff] }
  0xd8   :  { %v456_v16 = vmin.f32 %v440_v60, 7.0  ;;  %v253_v23 = vsel %vm2380_vm12, %v1690_v57, %v249_v36  ;;  %v366_v11 = vmul.f32 %v1692_v32, %v2368_v41  ;;  %v374_v21 = vand.u32 2147483647, %v2368_v41  ;;  %v774_v42 = vld [vmem:[#allocation3 + $0x30] sm:$0xff]  ;;  %523 = vst.msk [vmem:[#allocation3 + $0x70] sm:$0xff] %vm508_vm4, %v473_v19 }
  0xd9   :  { %497 = vst.msk [vmem:[#allocation2 + $0x14] sm:$0xf] %vm491_vm1, %v480_v8  ;;  %v1566_v48 = vor.u32 %v1565_v1, %v1564_v9  ;;  %v258_v2 = vsel %vm255_vm13, %v257_v26, %v253_v23  ;;  %vm371_vm2 = vweird.f32 %v1692_v32  ;;  %v376_v49 = vand.u32 2147483648, %v2368_v41  ;;  %816 = vperm.xlu1 %1660, %v774_v42   ;;  %v776_v41 = vld [vmem:[#allocation3 + $0x40] sm:$0xff] }
  0xda   :  { %v488_v38 = vpack.c.bf16 %v456_v16, %v456_v16  ;;  %v259_v4 = vmul.f32 7.0, %v258_v2  ;;  %v367_v20 = vsub.f32 1.0, %v366_v11  ;;  %v474_v54 = vmul.f32 0.14285715, %v2386_v30  ;;  %vm2412_vm5 = vmor %vm370_vm14, %vm371_vm2 }
  0xdb   :  { %v1567_v51 = vsel %vm2388_vm15, %v1566_v48, %v399_v14  ;;  %vm130_vm3 = vcmp.eq.f32.partialorder %v98_v47, 0.0  ;;  %vm2416_vm8 = vcmp.eq.f32.partialorder %v374_v21, 8.507059e+37  ;;  %vm385_vm7 = vweird.f32 %v2386_v30  ;;  %v779_v48 = vld [vmem:[#allocation3 + $0x58] sm:$0xff] }
  0xdc   :  { %505 = vst.msk [vmem:[#allocation2 + $0x34] sm:$0xf] %vm491_vm1, %v488_v38  ;;  %v431_v18 = vmax.f32 %v1567_v51, -8.0  ;;  %v401_v25 = vmul.f32 %v1448_v43, %v259_v4  ;;  %v368_v17 = vmul.f32 %v1692_v32, %v367_v20  ;;  %v2407_v33 = vsel %vm130_vm3, 1.0, %v98_v47 }
  0xdd   :  { %524 = vst.msk [vmem:[#allocation3 + $0x78] sm:$0xff] %vm508_vm4, %v474_v54  ;;  %v1694_v22 = vpop.eup %1693  ;;  %v377_v43 = vor.u32 1.1754944e-38, %v376_v49  ;;  %1695 = vrcp.f32 %v2407_v33  ;;  %1371 = vmatmul.msk.bf16.gmra.mxu0 %vm74_vm0, %v1419_v24  ;;  %1375 = vmatmul.msk.bf16.gmra.mxu2 %vm74_vm0, %v1423_v3  ;;  %v389_v50 = vand.u32 2147483647, %v2386_v30  ;;  %v391_v14 = vand.u32 2147483648, %v2386_v30 }
  0xde   :  { %v447_v55 = vmin.f32 %v431_v18, 7.0  ;;  %v1578_v0 = vcvt.f32.s32 %v401_v25  ;;  %v1576_v45 = vand.u32 2147483647, %v401_v25  ;;  %v369_v61 = vadd.f32 %v1692_v32, %v368_v17  ;;  %1395 = vmatmul.msk.bf16.gmra.mxu1 %vm74_vm0, %v1419_v24  ;;  %1399 = vmatmul.msk.bf16.gmra.mxu3 %vm74_vm0, %v1423_v3 }
  0xdf   :  { %v381_v63 = vmul.f32 %v1694_v22, %v2386_v30  ;;  %v1581_v37 = vand.u32 2147483648, %v401_v25  ;;  %vm386_vm6 = vweird.f32 %v1694_v22  ;;  %v466_v7 = vmul.f32 0.14285715, %v2407_v33 }
  0xe0   :  { %v479_v62 = vpack.c.bf16 %v447_v55, %v447_v55  ;;  %v1579_v31 = vcvt.s32.f32 %v1578_v0  ;;  %v373_v5 = vsel %vm2412_vm5, %v1692_v32, %v369_v61  ;;  %vm2435_vm9 = vcmp.lt.f32.partialorder %v1576_v45, 8388608.0  ;;  %vm2444_vm10 = vmor %vm385_vm7, %vm386_vm6  ;;  %v778_v61 = vld [vmem:[#allocation3 + $0x50] sm:$0xff] }
  0xe1   :  { %v382_v13 = vsub.f32 1.0, %v381_v63  ;;  %v378_v15 = vsel %vm2416_vm8, %v377_v43, %v373_v5  ;;  %826 = vperm.xlu1 %1660, %v776_v41   ;;  %516 = vst.msk [vmem:[#allocation3 + $0x38] sm:$0xff] %vm508_vm4, %v466_v7  ;;  %v392_v1 = vor.u32 1.1754944e-38, %v391_v14  ;;  %vm390_vm11 = vcmp.eq.f32.partialorder %v389_v50, 8.507059e+37 }
  0xe2   :  { %496 = vst.msk [vmem:[#allocation2 + $0x10] sm:$0xf] %vm491_vm1, %v479_v62  ;;  %v1580_v28 = vand.u32 2147483647, %v1579_v31  ;;  %v379_v35 = vmul.f32 7.0, %v378_v15  ;;  %vm265_vm4 = vweird.f32 %v2407_v33  ;;  %v271_v9 = vand.u32 2147483648, %v2407_v33 }
  0xe3   :  { %v383_v59 = vmul.f32 %v1694_v22, %v382_v13  ;;  %v1696_v26 = vpop.eup %1695  ;;  %v781_v15 = vld [vmem:[#allocation3 + $0x68] sm:$0xff] }
  0xe4   :  { %v1582_v27 = vor.u32 %v1581_v37, %v1580_v28  ;;  %v783_v58 = vld [vmem:[#allocation3 + $0x78] sm:$0xff]  ;;  %v409_v56 = vmul.f32 %v1464_v44, %v379_v35  ;;  %v261_v60 = vmul.f32 %v1696_v26, %v2407_v33  ;;  %v269_v44 = vand.u32 2147483647, %v2407_v33  ;;  %v1424_v33 = vld [vmem:[#allocation2 + $0x30] sm:$0xff] }
  0xe5   :  { %v384_v34 = vadd.f32 %v1694_v22, %v383_v59  ;;  %861 = vperm.xlu0 %1662, %v783_v58   ;;  %vm266_vm12 = vweird.f32 %v1696_v26  ;;  %v272_v4 = vor.u32 1.1754944e-38, %v271_v9 }
  0xe6   :  { %v1583_v53 = vsel %vm2435_vm9, %v1582_v27, %v401_v25  ;;  %v1642_v8 = vcvt.f32.s32 %v409_v56  ;;  %v1640_v19 = vand.u32 2147483647, %v409_v56  ;;  %v262_v32 = vsub.f32 1.0, %v261_v60  ;;  %vm2458_vm13 = vmor %vm265_vm4, %vm266_vm12 }
  0xe7   :  { %v433_v36 = vmax.f32 %v1583_v53, -8.0  ;;  %v388_v30 = vsel %vm2444_vm10, %v1694_v22, %v384_v34  ;;  %v1645_v23 = vand.u32 2147483648, %v409_v56  ;;  %vm270_vm15 = vcmp.eq.f32.partialorder %v269_v44, 8.507059e+37  ;;  %v2489_v53 = vld [vmem:[%s2898_s2] ss:$0 sm:$0xff] }
  0xe8   :  { %v1643_v12 = vcvt.s32.f32 %v1642_v8  ;;  %v393_v47 = vsel %vm390_vm11, %v392_v1, %v388_v30  ;;  %v263_v11 = vmul.f32 %v1696_v26, %v262_v32  ;;  %v775_v49 = vld [vmem:[#allocation3 + $0x38] sm:$0xff]  ;;  %vm1641_vm14 = vcmp.lt.f32.partialorder %v1640_v19, 8388608.0 }
  0xe9   :  { %v449_v16 = vmin.f32 %v433_v36, 7.0  ;;  %v394_v2 = vmul.f32 7.0, %v393_v47  ;;  %841 = vperm.xlu1 %1660, %v779_v48   ;;  %821 = vperm.xlu2 %1661, %v775_v49   ;;  %v1420_v17 = vld [vmem:[#allocation2 + $0x10] sm:$0xff] }
  0xea   :  { %v1644_v42 = vand.u32 2147483647, %v1643_v12  ;;  %v264_v20 = vadd.f32 %v1696_v26, %v263_v11 }
  0xeb   :  { %v481_v21 = vpack.c.bf16 %v449_v16, %v449_v16  ;;  %v410_v51 = vmul.f32 %v1465_v46, %v394_v2  ;;  %v782_v46 = vld [vmem:[#allocation3 + $0x70] sm:$0xff] }
  0xec   :  { %v1646_v54 = vor.u32 %v1645_v23, %v1644_v42  ;;  %v268_v25 = vsel %vm2458_vm13, %v1696_v26, %v264_v20 }
  0xed   :  { %498 = vst.msk [vmem:[#allocation2 + $0x18] sm:$0xf] %vm491_vm1, %v481_v21  ;;  %v1650_v18 = vcvt.f32.s32 %v410_v51  ;;  %v1648_v55 = vand.u32 2147483647, %v410_v51  ;;  %v273_v0 = vsel %vm270_vm15, %v272_v4, %v268_v25  ;;  %v1653_v43 = vand.u32 2147483648, %v410_v51  ;;  %1372 = vmatmul.msk.bf16.gmra.mxu0 %vm74_vm0, %v1420_v17  ;;  %1376 = vmatmul.msk.bf16.gmra.mxu2 %vm74_vm0, %v1424_v33 }
  0xee   :  { %v1647_v22 = vsel %vm1641_vm14, %v1646_v54, %v409_v56  ;;  %v274_v40 = vmul.f32 7.0, %v273_v0  ;;  %1396 = vmatmul.msk.bf16.gmra.mxu1 %vm74_vm0, %v1420_v17  ;;  %1400 = vmatmul.msk.bf16.gmra.mxu3 %vm74_vm0, %v1424_v33 }
  0xef   :  { %v441_v6 = vmax.f32 %v1647_v22, -8.0  ;;  %v1651_v57 = vcvt.s32.f32 %v1650_v18  ;;  %vm1649_vm2 = vcmp.lt.f32.partialorder %v1648_v55, 8388608.0 }
  0xf0   :  { %v402_v45 = vmul.f32 %v1449_v52, %v274_v40 }
  0xf1   :  { %v457_v24 = vmin.f32 %v441_v6, 7.0  ;;  %v1652_v3 = vand.u32 2147483647, %v1651_v57  ;;  %856 = vperm.xlu1 %1660, %v782_v46   ;;  %836 = vperm.xlu2 %1661, %v778_v61   ;;  %v2525_v61 = vld [vmem:[%s2900_s4] ss:$0 sm:$0xff]  ;;  %s1788_s4 = smov [#allocation4]  }
  0xf2   :  { %v1586_v31 = vcvt.f32.s32 %v402_v45  ;;  %v1584_v37 = vand.u32 2147483647, %v402_v45  ;;  %v1589_v50 = vand.u32 2147483648, %v402_v45  ;;  %s1308_s25 = sshll.u32 %s1788_s4, 4  ;;  %s1309_s25 = int_to_ptr.vmem [resolvable:$true] %s1308_s25 }
  0xf3   :  { %v489_v63 = vpack.c.bf16 %v457_v24, %v457_v24  ;;  %v1654_v62 = vor.u32 %v1653_v43, %v1652_v3 }
  0xf4   :  { %v1587_v13 = vcvt.s32.f32 %v1586_v31  ;;  %vm1585_vm3 = vcmp.lt.f32.partialorder %v1584_v37, 8388608.0 }
  0xf5   :  { %506 = vst.msk [vmem:[#allocation2 + $0x38] sm:$0xf] %vm491_vm1, %v489_v63  ;;  %v1655_v5 = vsel %vm1649_vm2, %v1654_v62, %v410_v51 }
  0xf6   :  { %v442_v14 = vmax.f32 %v1655_v5, -8.0  ;;  %v1588_v41 = vand.u32 2147483647, %v1587_v13 }
  0xf8   :  { %v458_v28 = vmin.f32 %v442_v14, 7.0  ;;  %v1590_v39 = vor.u32 %v1589_v50, %v1588_v41 }
  0xf9   :  { %851 = vperm.xlu2 %1661, %v781_v15  }
  0xfa   :  { %v490_v52 = vpack.c.bf16 %v458_v28, %v458_v28  ;;  %v1591_v7 = vsel %vm1585_vm3, %v1590_v39, %v402_v45 }
  0xfb   :  { %v434_v29 = vmax.f32 %v1591_v7, -8.0 }
  0xfc   :  { %507 = vst.msk [vmem:[#allocation2 + $0x3c] sm:$0xf] %vm491_vm1, %v490_v52 }
  0xfd   :  { %v450_v35 = vmin.f32 %v434_v29, 7.0 }
  0xff   :  { %v482_v59 = vpack.c.bf16 %v450_v35, %v450_v35 }
 0x101   :  { %499 = vst.msk [vmem:[#allocation2 + $0x1c] sm:$0xf] %vm491_vm1, %v482_v59 }
 0x103   :  { %v1425_v27 = vld [vmem:[#allocation2 + $0x38] sm:$0xff] }
 0x104   :  { %1377 = vmatmul.msk.bf16.gmra.mxu2 %vm74_vm0, %v1425_v27  ;;  %1401 = vmatmul.msk.bf16.gmra.mxu3 %vm74_vm0, %v1425_v27 }
 0x108   :  { %v1421_v58 = vld [vmem:[#allocation2 + $0x18] sm:$0xff] }
 0x109   :  { %1373 = vmatmul.msk.bf16.gmra.mxu0 %vm74_vm0, %v1421_v58  ;;  %1397 = vmatmul.msk.bf16.gmra.mxu1 %vm74_vm0, %v1421_v58  ;;  %v792_v56 = vpop.permute.xlu2 %791 }
 0x111   :  { %v2482_v10 = vpop.permute.xlu2 %801 }
 0x119   :  { %v2496_v9 = vpop.permute.xlu2 %811 }
 0x121   :  { %v787_v26 = vpop.permute.xlu1 %786 }
 0x126   :  { %v2494_v44 = vpop.permute.xlu0 %796 }
 0x12e   :  { %v832_v38 = vpop.permute.xlu0 %831 }
 0x143   :  { %v2480_v34 = vpop.permute.xlu1 %806  ;;  %v2507_v51 = vpop.permute.xlu2 %821 }
 0x14a   :  { %v647_v60 = vpop.f32.mrf.mxu0 }
 0x14b   :  { %v2484_v1 = vpop.permute.xlu1 %816  ;;  %v864_v36 = vmul.f32 %v787_v26, %v647_v60  ;;  %v728_v47 = vpop.f32.mrf.mxu1 }
 0x14c   :  { %v900_v45 = vmul.f32 %v787_v26, %v728_v47  ;;  %v2529_v62 = vpop.permute.xlu2 %836 }
 0x14d   :  { %v2492_v8 = vmul.f32 %v2489_v53, %v864_v36 }
 0x14e   :  { %v2533_v39 = vmul.f32 %v2525_v61, %v900_v45 }
 0x14f   :  { %v1402_v19 = vmul.f32 -1.442695, %v2492_v8 }
 0x150   :  { %v667_v30 = vpop.f32.mrf.mxu2 }
 0x151   :  { %1697 = vpow2.f32 %v1402_v19  ;;  %v748_v54 = vpop.f32.mrf.mxu3 }
 0x152   :  { %v649_v12 = vpop.f32.mrf.mxu0 }
 0x153   :  { %v827_v32 = vpop.permute.xlu1 %826  ;;  %v865_v23 = vmul.f32 %v792_v56, %v649_v12  ;;  %v730_v0 = vpop.f32.mrf.mxu1 }
 0x154   :  { %v872_v16 = vmul.f32 %v827_v32, %v667_v30  ;;  %v901_v63 = vmul.f32 %v792_v56, %v730_v0  ;;  %v2535_v52 = vmul.f32 %v827_v32, %v748_v54 }
 0x155   :  { %v2503_v2 = vmul.f32 %v2489_v53, %v865_v23 }
 0x156   :  { %v2500_v48 = vmul.f32 %v2489_v53, %v872_v16  ;;  %v2538_v15 = vmul.f32 %v2525_v61, %v901_v63 }
 0x157   :  { %v1698_v21 = vpop.eup %1697  ;;  %v1403_v42 = vmul.f32 -1.442695, %v2503_v2 }
 0x158   :  { %v1410_v11 = vmul.f32 -1.442695, %v2500_v48  ;;  %v984_v4 = vadd.f32 1.0, %v1698_v21  ;;  %v669_v49 = vpop.f32.mrf.mxu2 }
 0x159   :  { %v873_v20 = vmul.f32 %v832_v38, %v669_v49  ;;  %v750_v50 = vpop.f32.mrf.mxu3 }
 0x15a   :  { %1699 = vpow2.f32 %v1410_v11  ;;  %v652_v18 = vpop.f32.mrf.mxu0  ;;  %v1009_v37 = vand.u32 2147483647, %v984_v4  ;;  %v1011_v13 = vand.u32 2147483648, %v984_v4  ;;  %vm1005_vm0 = vweird.f32 %v984_v4 }
 0x15b   :  { %1701 = vpow2.f32 %v1403_v42  ;;  %v2510_v25 = vmul.f32 %v2489_v53, %v873_v20  ;;  %v866_v17 = vmul.f32 %v2494_v44, %v652_v18  ;;  %v2549_v58 = vmul.f32 %v832_v38, %v750_v50 }
 0x15c   :  { %1703 = vrcp.f32 %v984_v4  ;;  %vm2545_vm5 = vcmp.eq.f32.partialorder %v1009_v37, 8.507059e+37  ;;  %v1012_v60 = vor.u32 1.1754944e-38, %v1011_v13  ;;  %v733_v13 = vpop.f32.mrf.mxu1 }
 0x15d   :  { %v1411_v33 = vmul.f32 -1.442695, %v2510_v25  ;;  %v2515_v22 = vmul.f32 %v2489_v53, %v866_v17 }
 0x15f   :  { %1705 = vpow2.f32 %v1411_v33  ;;  %v1404_v43 = vmul.f32 -1.442695, %v2515_v22 }
 0x160   :  { %v1700_v55 = vpop.eup %1699  ;;  %v672_v24 = vpop.f32.mrf.mxu2 }
 0x161   :  { %v1702_v6 = vpop.eup %1701  ;;  %v2517_v57 = vadd.f32 1.0, %v1700_v55  ;;  %v874_v14 = vmul.f32 %v2529_v62, %v672_v24  ;;  %v2589_v24 = vpop.permute.xlu1 %841 }
 0x162   :  { %v1704_v40 = vpop.eup %1703  ;;  %v2520_v46 = vadd.f32 1.0, %v1702_v6  ;;  %v654_v5 = vpop.f32.mrf.mxu0 }
 0x163   :  { %v1001_v3 = vmul.f32 %v1704_v40, %v984_v4  ;;  %1707 = vrcp.f32 %v2517_v57  ;;  %vm1006_vm1 = vweird.f32 %v1704_v40  ;;  %v867_v29 = vmul.f32 %v2482_v10, %v654_v5 }
 0x164   :  { %1709 = vrcp.f32 %v2520_v46  ;;  %v2552_v26 = vmul.f32 %v2489_v53, %v874_v14  ;;  %v1129_v19 = vand.u32 2147483647, %v2517_v57  ;;  %vm2559_vm8 = vmor %vm1005_vm0, %vm1006_vm1  ;;  %vm1125_vm7 = vweird.f32 %v2517_v57 }
 0x165   :  { %v1002_v31 = vsub.f32 1.0, %v1001_v3  ;;  %1711 = vpow2.f32 %v1404_v43  ;;  %v1706_v41 = vpop.eup %1705  ;;  %v1131_v16 = vand.u32 2147483648, %v2517_v57  ;;  %vm1020_vm6 = vweird.f32 %v2520_v46 }
 0x166   :  { %v2540_v7 = vadd.f32 1.0, %v1706_v41  ;;  %v2572_v42 = vmul.f32 %v2489_v53, %v867_v29  ;;  %v1024_v4 = vand.u32 2147483647, %v2520_v46  ;;  %v1026_v49 = vand.u32 2147483648, %v2520_v46 }
 0x167   :  { %v1003_v28 = vmul.f32 %v1704_v40, %v1002_v31  ;;  %v1412_v20 = vmul.f32 -1.442695, %v2552_v26  ;;  %vm2579_vm10 = vcmp.eq.f32.partialorder %v1129_v19, 8.507059e+37  ;;  %v1132_v33 = vor.u32 1.1754944e-38, %v1131_v16 }
 0x168   :  { %1713 = vrcp.f32 %v2540_v7  ;;  %v674_v23 = vpop.f32.mrf.mxu2  ;;  %v1144_v43 = vand.u32 2147483647, %v2540_v7  ;;  %vm1025_vm12 = vcmp.eq.f32.partialorder %v1024_v4, 8.507059e+37  ;;  %v1027_v63 = vor.u32 1.1754944e-38, %v1026_v49  ;;  %v753_v49 = vpop.f32.mrf.mxu3 }
 0x169   :  { %v2543_v35 = vpop.eup %1707  ;;  %v1004_v59 = vadd.f32 %v1704_v40, %v1003_v28  ;;  %vm1140_vm14 = vweird.f32 %v2540_v7  ;;  %v1146_v28 = vand.u32 2147483648, %v2540_v7 }
 0x16a   :  { %v1710_v56 = vpop.eup %1709  ;;  %v1121_v36 = vmul.f32 %v2543_v35, %v2517_v57  ;;  %vm1126_vm9 = vweird.f32 %v2543_v35  ;;  %v657_v37 = vpop.f32.mrf.mxu0  ;;  %v875_v57 = vmul.f32 %v2589_v24, %v674_v23  ;;  %vm2609_vm15 = vcmp.eq.f32.partialorder %v1144_v43, 8.507059e+37 }
 0x16b   :  { %v1712_v30 = vpop.eup %1711  ;;  %v1016_v12 = vmul.f32 %v1710_v56, %v2520_v46  ;;  %v1008_v47 = vsel %vm2559_vm8, %v1704_v40, %v1004_v59  ;;  %vm1021_vm11 = vweird.f32 %v1710_v56  ;;  %v1405_v40 = vmul.f32 -1.442695, %v2572_v42  ;;  %vm2593_vm4 = vmor %vm1125_vm7, %vm1126_vm9  ;;  %v2627_v23 = vpop.permute.xlu0 %846 }
 0x16c   :  { %v1122_v11 = vsub.f32 1.0, %v1121_v36  ;;  %v2569_v21 = vadd.f32 1.0, %v1712_v30  ;;  %v1013_v17 = vsel %vm2545_vm5, %v1012_v60, %v1008_v47  ;;  %vm1022_vm13 = vmor %vm1020_vm6, %vm1021_vm11  ;;  %v2614_v59 = vmul.f32 %v2489_v53, %v875_v57 }
 0x16d   :  { %v1017_v38 = vsub.f32 1.0, %v1016_v12  ;;  %v1240_v5 = vmul.f32 %v1013_v17, %v2492_v8  ;;  %v868_v27 = vmul.f32 %v2480_v34, %v657_v37  ;;  %v929_v43 = vmul.f32 %v2525_v61, %v2549_v58 }
 0x16e   :  { %v1123_v54 = vmul.f32 %v2543_v35, %v1122_v11  ;;  %1715 = vrcp.f32 %v2569_v21  ;;  %v1714_v0 = vpop.eup %1713  ;;  %v1413_v16 = vmul.f32 -1.442695, %v2614_v59  ;;  %vm1035_vm1 = vweird.f32 %v2569_v21 }
 0x16f   :  { %v1018_v55 = vmul.f32 %v1710_v56, %v1017_v38  ;;  %1717 = vpow2.f32 %v1412_v20  ;;  %v1136_v31 = vmul.f32 %v1714_v0, %v2540_v7  ;;  %vm1141_vm2 = vweird.f32 %v1714_v0 }
 0x170   :  { %v1124_v6 = vadd.f32 %v2543_v35, %v1123_v54  ;;  %1719 = vpow2.f32 %v1405_v40  ;;  %v1256_v30 = vmul.f32 %v1240_v5, %v2533_v39  ;;  %v2625_v12 = vmul.f32 %v2489_v53, %v868_v27  ;;  %vm1142_vm3 = vmor %vm1140_vm14, %vm1141_vm2  ;;  %v755_v27 = vpop.f32.mrf.mxu3 }
 0x171   :  { %v1019_v45 = vadd.f32 %v1710_v56, %v1018_v55  ;;  %v1137_v41 = vsub.f32 1.0, %v1136_v31  ;;  %v1147_v39 = vor.u32 1.1754944e-38, %v1146_v28  ;;  %1721 = vpow2.f32 %v1413_v16 }
 0x172   :  { %v1128_v50 = vsel %vm2593_vm4, %v2543_v35, %v1124_v6  ;;  %v1406_v20 = vmul.f32 -1.442695, %v2625_v12  ;;  %v659_v37 = vpop.f32.mrf.mxu0 }
 0x173   :  { %v1023_v14 = vsel %vm1022_vm13, %v1710_v56, %v1019_v45  ;;  %v1138_v36 = vmul.f32 %v1714_v0, %v1137_v41  ;;  %v677_v56 = vpop.f32.mrf.mxu2  ;;  %v1133_v32 = vsel %vm2579_vm10, %v1132_v33, %v1128_v50 }
 0x174   :  { %v2607_v29 = vpop.eup %1715  ;;  %v1028_v8 = vsel %vm1025_vm12, %v1027_v63, %v1023_v14  ;;  %v876_v54 = vmul.f32 %v2627_v23, %v677_v56  ;;  %v1248_v18 = vmul.f32 %v1133_v32, %v2500_v48  ;;  %v902_v48 = vmul.f32 %v2494_v44, %v733_v13 }
 0x175   :  { %v1241_v60 = vmul.f32 %v1028_v8, %v2503_v2  ;;  %v1031_v35 = vmul.f32 %v2607_v29, %v2569_v21  ;;  %v1718_v19 = vpop.eup %1717  ;;  %v1139_v47 = vadd.f32 %v1714_v0, %v1138_v36  ;;  %v910_v63 = vmul.f32 %v2529_v62, %v753_v49 }
 0x176   :  { %v2630_v38 = vadd.f32 1.0, %v1718_v19  ;;  %v1720_v4 = vpop.eup %1719  ;;  %v2650_v3 = vmul.f32 %v2489_v53, %v876_v54  ;;  %vm1036_vm0 = vweird.f32 %v2607_v29  ;;  %v1041_v13 = vand.u32 2147483648, %v2569_v21 }
 0x177   :  { %v1257_v2 = vmul.f32 %v1241_v60, %v2538_v15  ;;  %v1032_v11 = vsub.f32 1.0, %v1031_v35  ;;  %v1143_v33 = vsel %vm1142_vm3, %v1714_v0, %v1139_v47  ;;  %v928_v15 = vmul.f32 %v2525_v61, %v2535_v52  ;;  %v735_v0 = vpop.f32.mrf.mxu1  ;;  %v1722_v31 = vpop.eup %1721  ;;  %vm2667_vm5 = vmor %vm1035_vm1, %vm1036_vm0 }
 0x178   :  { %1723 = vrcp.f32 %v2630_v38  ;;  %v1148_v7 = vsel %vm2609_vm15, %v1147_v39, %v1143_v33  ;;  %v2646_v40 = vadd.f32 1.0, %v1720_v4  ;;  %v1414_v58 = vmul.f32 -1.442695, %v2650_v3  ;;  %v2690_v39 = vpop.permute.xlu2 %851 }
 0x179   :  { %v1469_v17 = vpack.c.bf16 %v1257_v2, %v1256_v30  ;;  %v1033_v55 = vmul.f32 %v2607_v29, %v1032_v11  ;;  %v1249_v6 = vmul.f32 %v1148_v7, %v2510_v25  ;;  %1725 = vpow2.f32 %v1406_v20 }
 0x17a   :  { %v1264_v52 = vmul.f32 %v1248_v18, %v928_v15  ;;  %1727 = vrcp.f32 %v2646_v40  ;;  %v903_v57 = vmul.f32 %v2482_v10, %v735_v0  ;;  %v2661_v50 = vadd.f32 1.0, %v1722_v31 }
 0x17b   :  { %1470 = vst [vmem:[#allocation4] sm:$0xff] %v1469_v17   ;;  %v1265_v45 = vmul.f32 %v1249_v6, %v929_v43  ;;  %v1034_v25 = vadd.f32 %v2607_v29, %v1033_v55  ;;  %v1039_v62 = vand.u32 2147483647, %v2569_v21  ;;  %v922_v8 = vmul.f32 %v2525_v61, %v902_v48  ;;  %v679_v36 = vpop.f32.mrf.mxu2 }
 0x17c   :  { %v2673_v46 = vmul.f32 %v2525_v61, %v910_v63  ;;  %1729 = vrcp.f32 %v2661_v50  ;;  %v1042_v56 = vor.u32 1.1754944e-38, %v1041_v13  ;;  %v1159_v19 = vand.u32 2147483647, %v2630_v38 }
 0x17d   :  { %v1489_v44 = vpack.c.bf16 %v1265_v45, %v1264_v52  ;;  %v1038_v10 = vsel %vm2667_vm5, %v2607_v29, %v1034_v25  ;;  %1731 = vpow2.f32 %v1414_v58  ;;  %v923_v30 = vmul.f32 %v2525_v61, %v903_v57 }
 0x17e   :  { %v2657_v5 = vpop.eup %1723  ;;  %v869_v32 = vmul.f32 %v2496_v9, %v659_v37  ;;  %vm1040_vm8 = vcmp.eq.f32.partialorder %v1039_v62, 8.507059e+37  ;;  %v1161_v2 = vand.u32 2147483648, %v2630_v38  ;;  %v1054_v11 = vand.u32 2147483647, %v2646_v40 }
 0x17f   :  { %v1151_v14 = vmul.f32 %v2657_v5, %v2630_v38  ;;  %v1726_v41 = vpop.eup %1725  ;;  %1516 = vst [vmem:[#allocation4 + $0x20] sm:$0xff] %v1489_v44   ;;  %v1043_v47 = vsel %vm1040_vm8, %v1042_v56, %v1038_v10  ;;  %v911_v4 = vmul.f32 %v2589_v24, %v755_v27  ;;  %vm1156_vm7 = vweird.f32 %v2657_v5  ;;  %v738_v57 = vpop.f32.mrf.mxu1 }
 0x180   :  { %v2679_v60 = vadd.f32 1.0, %v1726_v41  ;;  %v1728_v35 = vpop.eup %1727  ;;  %v2695_v54 = vmul.f32 %v2489_v53, %v869_v32  ;;  %vm1155_vm6 = vweird.f32 %v2630_v38  ;;  %vm2698_vm9 = vcmp.eq.f32.partialorder %v1159_v19, 8.507059e+37  ;;  %v2736_v10 = vpop.permute.xlu1 %856 }
 0x181   :  { %v1152_v21 = vsub.f32 1.0, %v1151_v14  ;;  %v1046_v29 = vmul.f32 %v1728_v35, %v2646_v40  ;;  %v1056_v24 = vand.u32 2147483648, %v2646_v40  ;;  %v877_v33 = vmul.f32 %v2690_v39, %v679_v36  ;;  %vm2708_vm11 = vmor %vm1155_vm6, %vm1156_vm7 }
 0x182   :  { %1733 = vrcp.f32 %v2679_v60  ;;  %v1730_v18 = vpop.eup %1729  ;;  %v1162_v7 = vor.u32 1.1754944e-38, %v1161_v2  ;;  %vm1051_vm10 = vweird.f32 %v1728_v35  ;;  %v1242_v48 = vmul.f32 %v1043_v47, %v2515_v22 }
 0x183   :  { %v1153_v16 = vmul.f32 %v2657_v5, %v1152_v21  ;;  %v1047_v20 = vsub.f32 1.0, %v1046_v29  ;;  %v1732_v15 = vpop.eup %1731  ;;  %v1166_v6 = vmul.f32 %v1730_v18, %v2661_v50  ;;  %vm1050_vm4 = vweird.f32 %v2646_v40 }
 0x184   :  { %vm2713_vm12 = vcmp.eq.f32.partialorder %v1054_v11, 8.507059e+37  ;;  %v2717_v52 = vadd.f32 1.0, %v1732_v15  ;;  %v1407_v31 = vmul.f32 -1.442695, %v2695_v54  ;;  %vm1052_vm13 = vmor %vm1050_vm4, %vm1051_vm10  ;;  %v1057_v58 = vor.u32 1.1754944e-38, %v1056_v24 }
 0x185   :  { %v1154_v49 = vadd.f32 %v2657_v5, %v1153_v16  ;;  %v1048_v55 = vmul.f32 %v1728_v35, %v1047_v20  ;;  %v1167_v22 = vsub.f32 1.0, %v1166_v6  ;;  %v1176_v40 = vand.u32 2147483648, %v2661_v50 }
 0x186   :  { %v662_v43 = vpop.f32.mrf.mxu0  ;;  %1735 = vrcp.f32 %v2717_v52  ;;  %v2728_v37 = vmul.f32 %v2489_v53, %v877_v33  ;;  %vm1171_vm14 = vweird.f32 %v1730_v18  ;;  %v1258_v14 = vmul.f32 %v1242_v48, %v922_v8 }
 0x187   :  { %v1158_v45 = vsel %vm2708_vm11, %v2657_v5, %v1154_v49  ;;  %v1049_v63 = vadd.f32 %v1728_v35, %v1048_v55  ;;  %v1168_v13 = vmul.f32 %v1730_v18, %v1167_v22  ;;  %v1174_v5 = vand.u32 2147483647, %v2661_v50  ;;  %v682_v62 = vpop.f32.mrf.mxu2  ;;  %v740_v38 = vpop.f32.mrf.mxu1 }
 0x188   :  { %v2723_v25 = vpop.eup %1733  ;;  %v1163_v41 = vsel %vm2698_vm9, %v1162_v7, %v1158_v45  ;;  %vm1170_vm15 = vweird.f32 %v2661_v50  ;;  %1737 = vpow2.f32 %v1407_v31  ;;  %v1415_v8 = vmul.f32 -1.442695, %v2728_v37 }
 0x189   :  { %v1053_v44 = vsel %vm1052_vm13, %v1728_v35, %v1049_v63  ;;  %v1169_v27 = vadd.f32 %v1730_v18, %v1168_v13  ;;  %v1061_v36 = vmul.f32 %v2723_v25, %v2679_v60  ;;  %vm1172_vm2 = vmor %vm1170_vm15, %vm1171_vm14  ;;  %v1177_v35 = vor.u32 1.1754944e-38, %v1176_v40 }
 0x18a   :  { %v1058_v28 = vsel %vm2713_vm12, %v1057_v58, %v1053_v44  ;;  %v870_v56 = vmul.f32 %v2484_v1, %v662_v43  ;;  %v878_v19 = vmul.f32 %v2736_v10, %v682_v62  ;;  %v1250_v32 = vmul.f32 %v1163_v41, %v2552_v26 }
 0x18b   :  { %v1243_v21 = vmul.f32 %v1058_v28, %v2572_v42  ;;  %v1173_v16 = vsel %vm1172_vm2, %v1730_v18, %v1169_v27  ;;  %vm1175_vm3 = vcmp.eq.f32.partialorder %v1174_v5, 8.507059e+37  ;;  %v931_v29 = vmul.f32 %v2525_v61, %v911_v4  ;;  %v2778_v5 = vpop.permute.xlu0 %861 }
 0x18c   :  { %v2745_v2 = vpop.eup %1735  ;;  %v1178_v42 = vsel %vm1175_vm3, %v1177_v35, %v1173_v16  ;;  %1739 = vpow2.f32 %v1415_v8  ;;  %v2749_v47 = vmul.f32 %v2489_v53, %v870_v56  ;;  %v1062_v17 = vsub.f32 1.0, %v1061_v36 }
 0x18d   :  { %v1259_v50 = vmul.f32 %v1243_v21, %v923_v30  ;;  %v1251_v20 = vmul.f32 %v1178_v42, %v2614_v59  ;;  %v1181_v26 = vmul.f32 %v2745_v2, %v2717_v52  ;;  %v758_v30 = vpop.f32.mrf.mxu3  ;;  %v2756_v24 = vmul.f32 %v2489_v53, %v878_v19 }
 0x18e   :  { %v664_v11 = vpop.f32.mrf.mxu0  ;;  %v1408_v18 = vmul.f32 -1.442695, %v2749_v47  ;;  %v1738_v33 = vpop.eup %1737  ;;  %v1266_v4 = vmul.f32 %v1250_v32, %v2673_v46  ;;  %v1063_v43 = vmul.f32 %v2723_v25, %v1062_v17  ;;  %v904_v46 = vmul.f32 %v2480_v34, %v738_v57 }
 0x18f   :  { %v1474_v49 = vpack.c.bf16 %v1259_v50, %v1258_v14  ;;  %v1267_v15 = vmul.f32 %v1251_v20, %v931_v29  ;;  %v871_v7 = vmul.f32 %v2507_v51, %v664_v11  ;;  %v2760_v55 = vadd.f32 1.0, %v1738_v33  ;;  %v684_v40 = vpop.f32.mrf.mxu2 }
 0x190   :  { %1741 = vpow2.f32 %v1408_v18  ;;  %v1416_v59 = vmul.f32 -1.442695, %v2756_v24  ;;  %v1182_v48 = vsub.f32 1.0, %v1181_v26  ;;  %v1069_v22 = vand.u32 2147483647, %v2679_v60 }
 0x191   :  { %1513 = vst [vmem:[#allocation4 + $0x8] sm:$0xff] %v1474_v49   ;;  %v1494_v6 = vpack.c.bf16 %v1267_v15, %v1266_v4  ;;  %v2765_v0 = vmul.f32 %v2489_v53, %v871_v7  ;;  %1743 = vrcp.f32 %v2760_v55  ;;  %v905_v31 = vmul.f32 %v2496_v9, %v740_v38 }
 0x192   :  { %v1740_v45 = vpop.eup %1739  ;;  %1745 = vpow2.f32 %v1416_v59  ;;  %v1064_v44 = vadd.f32 %v2723_v25, %v1063_v43  ;;  %vm1066_vm0 = vweird.f32 %v2723_v25  ;;  %v1183_v13 = vmul.f32 %v2745_v2, %v1182_v48 }
 0x193   :  { %1517 = vst [vmem:[#allocation4 + $0x28] sm:$0xff] %v1494_v6   ;;  %v2769_v63 = vadd.f32 1.0, %v1740_v45  ;;  %v1409_v58 = vmul.f32 -1.442695, %v2765_v0  ;;  %v1071_v57 = vand.u32 2147483648, %v2679_v60  ;;  %v2782_v62 = vmul.f32 %v2525_v61, %v904_v46 }
 0x194   :  { %v2785_v9 = vmul.f32 %v2627_v23, %v758_v30  ;;  %vm1065_vm1 = vweird.f32 %v2679_v60  ;;  %v1189_v14 = vand.u32 2147483647, %v2717_v52  ;;  %v879_v21 = vmul.f32 %v2778_v5, %v684_v40 }
 0x195   :  { %1747 = vrcp.f32 %v2769_v63  ;;  %v760_v41 = vpop.f32.mrf.mxu3  ;;  %vm2794_vm5 = vmor %vm1065_vm1, %vm1066_vm0  ;;  %vm2798_vm8 = vcmp.eq.f32.partialorder %v1069_v22, 8.507059e+37  ;;  %vm1186_vm7 = vweird.f32 %v2745_v2  ;;  %v1191_v60 = vand.u32 2147483648, %v2717_v52 }
 0x196   :  { %v1742_v34 = vpop.eup %1741  ;;  %1749 = vpow2.f32 %v1409_v58  ;;  %v925_v35 = vmul.f32 %v2525_v61, %v905_v31  ;;  %v1068_v56 = vsel %vm2794_vm5, %v2723_v25, %v1064_v44  ;;  %v1184_v19 = vadd.f32 %v2745_v2, %v1183_v13  ;;  %v743_v31 = vpop.f32.mrf.mxu1 }
 0x197   :  { %v2789_v28 = vadd.f32 1.0, %v1742_v34  ;;  %v1744_v27 = vpop.eup %1743  ;;  %v1072_v50 = vor.u32 1.1754944e-38, %v1071_v57  ;;  %v1086_v16 = vand.u32 2147483648, %v2760_v55  ;;  %v913_v42 = vmul.f32 %v2690_v39, %v760_v41 }
 0x198   :  { %v1746_v8 = vpop.eup %1745  ;;  %v1076_v32 = vmul.f32 %v1744_v27, %v2760_v55  ;;  %vm1185_vm6 = vweird.f32 %v2717_v52  ;;  %vm2816_vm9 = vcmp.eq.f32.partialorder %v1189_v14, 8.507059e+37  ;;  %v2821_v20 = vmul.f32 %v2489_v53, %v879_v21 }
 0x199   :  { %1751 = vrcp.f32 %v2789_v28  ;;  %v2813_v29 = vadd.f32 1.0, %v1746_v8  ;;  %v1073_v26 = vsel %vm2798_vm8, %v1072_v50, %v1068_v56  ;;  %vm2827_vm10 = vmor %vm1185_vm6, %vm1186_vm7  ;;  %v1192_v30 = vor.u32 1.1754944e-38, %v1191_v60 }
 0x19a   :  { %v1077_v25 = vsub.f32 1.0, %v1076_v32  ;;  %v1084_v52 = vand.u32 2147483647, %v2760_v55  ;;  %v1188_v53 = vsel %vm2827_vm10, %v2745_v2, %v1184_v19  ;;  %vm1081_vm11 = vweird.f32 %v1744_v27 }
 0x19b   :  { %v1748_v11 = vpop.eup %1747  ;;  %1753 = vrcp.f32 %v2813_v29  ;;  %vm1080_vm4 = vweird.f32 %v2760_v55  ;;  %v1087_v4 = vor.u32 1.1754944e-38, %v1086_v16  ;;  %v1204_v43 = vand.u32 2147483647, %v2769_v63 }
 0x19c   :  { %v1750_v17 = vpop.eup %1749  ;;  %v1196_v18 = vmul.f32 %v1748_v11, %v2769_v63  ;;  %v1078_v33 = vmul.f32 %v1744_v27, %v1077_v25  ;;  %v1206_v48 = vand.u32 2147483648, %v2769_v63  ;;  %v1417_v38 = vmul.f32 -1.442695, %v2821_v20  ;;  %vm1082_vm12 = vmor %vm1080_vm4, %vm1081_vm11 }
 0x19d   :  { %v2838_v7 = vadd.f32 1.0, %v1750_v17  ;;  %v1193_v2 = vsel %vm2816_vm9, %v1192_v30, %v1188_v53  ;;  %vm1201_vm13 = vweird.f32 %v1748_v11  ;;  %v1244_v46 = vmul.f32 %v1073_v26, %v2625_v12 }
 0x19e   :  { %v1197_v15 = vsub.f32 1.0, %v1196_v18  ;;  %v1079_v6 = vadd.f32 %v1744_v27, %v1078_v33  ;;  %vm1085_vm14 = vcmp.eq.f32.partialorder %v1084_v52, 8.507059e+37  ;;  %vm1200_vm15 = vweird.f32 %v2769_v63  ;;  %v745_v17 = vpop.f32.mrf.mxu1  ;;  %v763_v18 = vpop.f32.mrf.mxu3 }
 0x19f   :  { %v2840_v59 = vpop.eup %1751  ;;  %1755 = vrcp.f32 %v2838_v7  ;;  %v1252_v34 = vmul.f32 %v1193_v2, %v2650_v3  ;;  %vm1202_vm2 = vmor %vm1200_vm15, %vm1201_vm13  ;;  %v1207_v14 = vor.u32 1.1754944e-38, %v1206_v48  ;;  %v932_v12 = vmul.f32 %v2525_v61, %v2785_v9 }
 0x1a0   :  { %v1198_v45 = vmul.f32 %v1748_v11, %v1197_v15  ;;  %v1091_v55 = vmul.f32 %v2840_v59, %v2789_v28  ;;  %v1083_v22 = vsel %vm1082_vm12, %v1744_v27, %v1079_v6  ;;  %1757 = vpow2.f32 %v1417_v38 }
 0x1a1   :  { %v1088_v58 = vsel %vm1085_vm14, %v1087_v4, %v1083_v22  ;;  %v2852_v13 = vpop.eup %1753  ;;  %vm1205_vm3 = vcmp.eq.f32.partialorder %v1204_v43, 8.507059e+37  ;;  %v1260_v27 = vmul.f32 %v1244_v46, %v2782_v62  ;;  %v933_v23 = vmul.f32 %v2525_v61, %v913_v42 }
 0x1a2   :  { %v1199_v40 = vadd.f32 %v1748_v11, %v1198_v45  ;;  %v1092_v44 = vsub.f32 1.0, %v1091_v55  ;;  %v1245_v57 = vmul.f32 %v1088_v58, %v2695_v54  ;;  %vm1096_vm0 = vweird.f32 %v2840_v59 }
 0x1a3   :  { %v1211_v60 = vmul.f32 %v2852_v13, %v2813_v29  ;;  %v1268_v8 = vmul.f32 %v1252_v34, %v932_v12  ;;  %v1101_v19 = vand.u32 2147483648, %v2789_v28  ;;  %vm1095_vm1 = vweird.f32 %v2789_v28 }
 0x1a4   :  { %v1203_v41 = vsel %vm1202_vm2, %v1748_v11, %v1199_v40  ;;  %v1093_v21 = vmul.f32 %v2840_v59, %v1092_v44  ;;  %v1261_v63 = vmul.f32 %v1245_v57, %v925_v35  ;;  %v1099_v62 = vand.u32 2147483647, %v2789_v28  ;;  %vm1097_vm5 = vmor %vm1095_vm1, %vm1096_vm0 }
 0x1a5   :  { %v1208_v36 = vsel %vm1205_vm3, %v1207_v14, %v1203_v41  ;;  %v1756_v9 = vpop.eup %1755  ;;  %v1212_v42 = vsub.f32 1.0, %v1211_v60  ;;  %v1102_v49 = vor.u32 1.1754944e-38, %v1101_v19  ;;  %v1116_v25 = vand.u32 2147483648, %v2838_v7 }
 0x1a6   :  { %v1253_v3 = vmul.f32 %v1208_v36, %v2728_v37  ;;  %v1094_v54 = vadd.f32 %v2840_v59, %v1093_v21  ;;  %v1479_v56 = vpack.c.bf16 %v1261_v63, %v1260_v27  ;;  %v1106_v35 = vmul.f32 %v1756_v9, %v2838_v7  ;;  %v1758_v37 = vpop.eup %1757 }
 0x1a7   :  { %v999_v26 = vadd.f32 1.0, %v1758_v37  ;;  %vm1100_vm8 = vcmp.eq.f32.partialorder %v1099_v62, 8.507059e+37  ;;  %vm1111_vm7 = vweird.f32 %v1756_v9  ;;  %v1114_v28 = vand.u32 2147483647, %v2838_v7 }
 0x1a8   :  { %v1269_v32 = vmul.f32 %v1253_v3, %v933_v23  ;;  %1514 = vst [vmem:[#allocation4 + $0x10] sm:$0xff] %v1479_v56   ;;  %v1098_v16 = vsel %vm1097_vm5, %v2840_v59, %v1094_v54  ;;  %v1107_v11 = vsub.f32 1.0, %v1106_v35  ;;  %v906_v52 = vmul.f32 %v2484_v1, %v743_v31 }
 0x1a9   :  { %v1103_v30 = vsel %vm1100_vm8, %v1102_v49, %v1098_v16  ;;  %1759 = vrcp.f32 %v999_v26  ;;  %v1213_v53 = vmul.f32 %v2852_v13, %v1212_v42  ;;  %vm1110_vm6 = vweird.f32 %v2838_v7 }
 0x1aa   :  { %v1499_v50 = vpack.c.bf16 %v1269_v32, %v1268_v8  ;;  %v1108_v39 = vmul.f32 %v1756_v9, %v1107_v11  ;;  %v907_v4 = vmul.f32 %v2507_v51, %v745_v17  ;;  %vm1112_vm9 = vmor %vm1110_vm6, %vm1111_vm7  ;;  %v1117_v15 = vor.u32 1.1754944e-38, %v1116_v25 }
 0x1ab   :  { %v1246_v59 = vmul.f32 %v1103_v30, %v2749_v47  ;;  %vm1115_vm10 = vcmp.eq.f32.partialorder %v1114_v28, 8.507059e+37  ;;  %v926_v43 = vmul.f32 %v2525_v61, %v906_v52  ;;  %v1214_v1 = vadd.f32 %v2852_v13, %v1213_v53 }
 0x1ac   :  { %1518 = vst [vmem:[#allocation4 + $0x30] sm:$0xff] %v1499_v50   ;;  %v1109_v33 = vadd.f32 %v1756_v9, %v1108_v39  ;;  %vm1216_vm11 = vweird.f32 %v2852_v13  ;;  %v927_v2 = vmul.f32 %v2525_v61, %v907_v4  ;;  %vm1215_vm4 = vweird.f32 %v2813_v29 }
 0x1ad   :  { %v1221_v51 = vand.u32 2147483648, %v2813_v29  ;;  %v1262_v45 = vmul.f32 %v1246_v59, %v926_v43  ;;  %v1219_v47 = vand.u32 2147483647, %v2813_v29  ;;  %vm1217_vm12 = vmor %vm1215_vm4, %vm1216_vm11  ;;  %v1236_v44 = vand.u32 2147483648, %v999_v26 }
 0x1ae   :  { %v1113_v6 = vsel %vm1112_vm9, %v1756_v9, %v1109_v33  ;;  %v1218_v22 = vsel %vm1217_vm12, %v2852_v13, %v1214_v1  ;;  %v1234_v57 = vand.u32 2147483647, %v999_v26  ;;  %v914_v12 = vmul.f32 %v2736_v10, %v763_v18 }
 0x1af   :  { %v1118_v48 = vsel %vm1115_vm10, %v1117_v15, %v1113_v6  ;;  %v1760_v7 = vpop.eup %1759  ;;  %v1222_v40 = vor.u32 1.1754944e-38, %v1221_v51  ;;  %vm1220_vm13 = vcmp.eq.f32.partialorder %v1219_v47, 8.507059e+37  ;;  %vm1230_vm15 = vweird.f32 %v999_v26 }
 0x1b0   :  { %v1247_v38 = vmul.f32 %v1118_v48, %v2765_v0  ;;  %v1226_v46 = vmul.f32 %v1760_v7, %v999_v26  ;;  %v765_v0 = vpop.f32.mrf.mxu3  ;;  %vm1231_vm14 = vweird.f32 %v1760_v7  ;;  %v1237_v21 = vor.u32 1.1754944e-38, %v1236_v44 }
 0x1b1   :  { %v1223_v14 = vsel %vm1220_vm13, %v1222_v40, %v1218_v22  ;;  %v915_v29 = vmul.f32 %v2778_v5, %v765_v0  ;;  %vm1232_vm2 = vmor %vm1230_vm15, %vm1231_vm14  ;;  %vm1235_vm3 = vcmp.eq.f32.partialorder %v1234_v57, 8.507059e+37  ;;  %v934_v36 = vmul.f32 %v2525_v61, %v914_v12 }
 0x1b2   :  { %v1263_v55 = vmul.f32 %v1247_v38, %v927_v2  ;;  %v1227_v58 = vsub.f32 1.0, %v1226_v46  ;;  %v1254_v13 = vmul.f32 %v1223_v14, %v2756_v24 }
 0x1b3   :  { %v935_v3 = vmul.f32 %v2525_v61, %v915_v29 }
 0x1b4   :  { %v1484_v31 = vpack.c.bf16 %v1263_v55, %v1262_v45  ;;  %v1228_v34 = vmul.f32 %v1760_v7, %v1227_v58  ;;  %v1270_v10 = vmul.f32 %v1254_v13, %v934_v36 }
 0x1b6   :  { %1515 = vst [vmem:[#allocation4 + $0x18] sm:$0xff] %v1484_v31   ;;  %v1229_v41 = vadd.f32 %v1760_v7, %v1228_v34 }
 0x1b8   :  { %v1233_v27 = vsel %vm1232_vm2, %v1760_v7, %v1229_v41 }
 0x1b9   :  { %v1238_v63 = vsel %vm1235_vm3, %v1237_v21, %v1233_v27 }
 0x1ba   :  { %v1255_v23 = vmul.f32 %v1238_v63, %v2821_v20 }
 0x1bc   :  { %v1271_v5 = vmul.f32 %v1255_v23, %v935_v3 }
 0x1be   :  { %v1504_v24 = vpack.c.bf16 %v1271_v5, %v1270_v10 }
 0x1c0   :  { %1519 = vst [vmem:[#allocation4 + $0x38] sm:$0xff] %v1504_v24  }
 0x1c1   :  { %1316 = dma.vmem_to_hbm [thread:$0]  %s1309_s25, 1024, %s1311_s28, [#allocation5], %s1789_s29, %s1789_s29, %s1790_s30  }
 0x1c2   :  { %1785 = dma.done.wait [#allocation5], 1024  }
 0x1c3   :  { %1786 = vsyncadd [#allocation5], 4294966272 }
 0x1c4   :  { %1321 = vsyncpa [#allocation5], 1 }

</bundles_post_ra>
